<compile_context>
chip_gen: v7x
topology: tpu7x:2x2x1
jax: 0.10.0
libtpu: 0.0.40
codegen_flags: <defaults>
</compile_context>

<pallas_src>
import jax
import jax.numpy as jnp
from jax.experimental import pallas as pl

HIDDEN = 768          # BLIP base multimodal hidden size (fixed by nn.Linear(768, ...))
NUM_CLASSES = 1000    # matches the module's default num_classes
SEQ = 8               # multimodal sequence length (CLS token at position 0)
SUBLANE = 8           # f32 sublane granule (vreg rows)
LANE = 128            # lane width


def _round_up(x, m):
    return ((x + m - 1) // m) * m


# ----------------------------------------------------------------------------
# Pallas kernel: out = (tanh(pre) + pos0) @ W + b   (fused CLS + classifier)
# ----------------------------------------------------------------------------
def fused_cls_classifier_kernel(pre_ref, pos_ref, w_ref, b_ref, o_ref):
    # pre_ref: [M, 768]  f32  (batch zero-padded to a multiple of 8 sublanes)
    # pos_ref: [1, 768]  f32  (pos_embed[0]; folded here instead of building
    #                          the [B, S, 768] tensor upstream)
    # w_ref:   [768, Cp] bf16 (MXU operand, lane-padded num_classes)
    # b_ref:   [1, Cp]   f32  (bias epilogue stays f32 -> fine on v5e VPU)
    # o_ref:   [M, Cp]   f32  (lane-dense unmasked stores)
    cls = jnp.tanh(pre_ref[...]) + pos_ref[...]                    # [M, 768] f32, EUP + VPU
    acc = jnp.dot(cls.astype(jnp.bfloat16), w_ref[...],
                  preferred_element_type=jnp.float32)              # MXU, f32 accumulate
    o_ref[...] = (acc + b_ref[...]).astype(o_ref.dtype)


def fused_classifier_forward(pre, pos0, weight, bias):
    """pre: [B, 768] f32; pos0: [768] f32; weight: [768, C] f32; bias: [C] f32 -> [B, C] f32."""
    B, D = pre.shape
    C = weight.shape[1]

    # Pad batch to the sublane granule (B=2 would leave masked partial stores)
    # and num_classes to the 128-lane granule (1000 -> 1024) for unmasked vst.
    M = max(SUBLANE, _round_up(B, SUBLANE))
    Cp = _round_up(C, LANE)

    pre_pad = jnp.zeros((M, D), jnp.float32).at[:B].set(pre)
    w_pad = jnp.pad(weight, ((0, 0), (0, Cp - C))).astype(jnp.bfloat16)  # bf16 weight DMA
    b_pad = jnp.pad(bias, (0, Cp - C)).reshape(1, Cp)

    # No grid: a single kernel invocation with everything resident in VMEM
    # (768*1024 bf16 weight = 1.5 MiB + activations < 4 MiB total), so there
    # is no pipeline / double-buffering / per-step overhead.  If B or C grow
    # to sizes that no longer fit, reintroduce a (M/256, N/256) grid with
    # dimension_semantics=("parallel", "parallel") to engage both v7x cores.
    out = pl.pallas_call(
        fused_cls_classifier_kernel,
        out_shape=jax.ShapeDtypeStruct((M, Cp), jnp.float32),
    )(
        pre_pad,
        pos0.reshape(1, D),
        w_pad,
        b_pad,
    )
    return out[:B, :C]


# ----------------------------------------------------------------------------
# Frozen backbone stand-in (plain JAX glue; under stop_gradient like
# torch.no_grad() in the reference forward).  Only the CLS pre-feature is
# produced -- the full [B, S, 768] multimodal_embeds is never built because
# the reference forward only consumes multimodal_embeds[:, 0, :].
# ----------------------------------------------------------------------------
# TODO(synk): the pretrained BLIP feature extractor (load_model_and_preprocess /
# model.extract_features) has no Pallas equivalent here; it is replaced by a
# deterministic synthetic projection reproducing only the output contract
# (a 768-d CLS multimodal embedding per sample).
def synthetic_blip_cls_prefeature(image, text_ids, params):
    B = image.shape[0]
    img_feat = image.reshape(B, -1).astype(jnp.float32)          # [B, 3*H*W]
    txt_feat = params["txt_embed"][text_ids].mean(axis=1)        # [B, 768]
    pre = img_feat @ params["img_proj"] + txt_feat               # [B, 768]
    return jax.lax.stop_gradient(pre)


def transfer_model_forward(image, text_ids, params):
    pre = synthetic_blip_cls_prefeature(image, text_ids, params)
    pos0 = jax.lax.stop_gradient(params["pos_embed"][0])         # [768]
    return fused_classifier_forward(pre, pos0, params["cls_w"], params["cls_b"])


# ----------------------------------------------------------------------------
# Deterministic parameter init + example run
# ----------------------------------------------------------------------------
def init_params(key, image_shape, num_classes=NUM_CLASSES, vocab=64):
    k1, k2, k3, k4, k5 = jax.random.split(key, 5)
    img_dim = image_shape[1] * image_shape[2] * image_shape[3]
    bound = 1.0 / jnp.sqrt(HIDDEN)  # matches nn.Linear default uniform bound
    return {
        "img_proj": jax.random.normal(k1, (img_dim, HIDDEN), jnp.float32) * 0.02,
        "txt_embed": jax.random.normal(k2, (vocab, HIDDEN), jnp.float32) * 0.02,
        "pos_embed": jax.random.normal(k3, (SEQ, HIDDEN), jnp.float32) * 0.02,
        "cls_w": jax.random.uniform(k4, (HIDDEN, num_classes), jnp.float32,
                                    minval=-bound, maxval=bound),
        "cls_b": jax.random.uniform(k5, (num_classes,), jnp.float32,
                                    minval=-bound, maxval=bound),
    }


if __name__ == "__main__":
    key = jax.random.PRNGKey(0)
    k_img, k_txt, k_par = jax.random.split(key, 3)

    B, C_in, H, W = 2, 3, 16, 16
    image = jax.random.normal(k_img, (B, C_in, H, W), jnp.float32)   # NCHW
    text_ids = jax.random.randint(k_txt, (B, SEQ), 0, 64, jnp.int32)

    params = init_params(k_par, image.shape)

    fwd = jax.jit(transfer_model_forward)
    out = jax.block_until_ready(fwd(image, text_ids, params))
    assert out.shape == (B, NUM_CLASSES)
    assert out.dtype == jnp.float32

    # Correctness checks of the fused Pallas kernel vs. plain JAX references.
    pre = synthetic_blip_cls_prefeature(image, text_ids, params)
    cls = jnp.tanh(pre) + params["pos_embed"][0]
    # (a) same math with bf16 MXU operands / f32 accumulation
    ref_bf16 = jnp.dot(cls.astype(jnp.bfloat16),
                       params["cls_w"].astype(jnp.bfloat16),
                       preferred_element_type=jnp.float32) + params["cls_b"]
    # (b) full-f32 reference (module semantics), looser tolerance for bf16 operands
    ref_f32 = cls @ params["cls_w"] + params["cls_b"]
    assert jnp.allclose(out, ref_bf16, atol=1e-2, rtol=1e-2)
    assert jnp.allclose(out, ref_f32, atol=3e-2, rtol=3e-2)

    print("KERNEL_OK")
</pallas_src>

<mosaic_0001>
module attributes {stable_mosaic.version = 11 : i64} {
  func.func @fused_cls_classifier_kernel(%arg0: memref<8x768xf32, #tpu.memory_space<vmem>>, %arg1: memref<1x768xf32, #tpu.memory_space<vmem>>, %arg2: memref<768x1024xbf16, #tpu.memory_space<vmem>>, %arg3: memref<1x1024xf32, #tpu.memory_space<vmem>>, %arg4: memref<8x1024xf32, #tpu.memory_space<vmem>>) attributes {dimension_semantics = [], scalar_prefetch = 0 : i64, scratch_operands = 0 : i64, tpu.core_type = #tpu.core_type<tc>} {
    %c0 = arith.constant 0 : index
    %c0_0 = arith.constant 0 : index
    %0 = vector.load %arg0[%c0, %c0_0] : memref<8x768xf32, #tpu.memory_space<vmem>>, vector<8x768xf32>
    %1 = math.tanh %0 : vector<8x768xf32>
    %c0_1 = arith.constant 0 : index
    %c0_2 = arith.constant 0 : index
    %2 = vector.load %arg1[%c0_1, %c0_2] : memref<1x768xf32, #tpu.memory_space<vmem>>, vector<1x768xf32>
    %3 = vector.broadcast %2 : vector<1x768xf32> to vector<8x768xf32>
    %4 = arith.addf %1, %3 : vector<8x768xf32>
    %5 = arith.truncf %4 : vector<8x768xf32> to vector<8x768xbf16>
    %c0_3 = arith.constant 0 : index
    %c0_4 = arith.constant 0 : index
    %6 = vector.load %arg2[%c0_3, %c0_4] : memref<768x1024xbf16, #tpu.memory_space<vmem>>, vector<768x1024xbf16>
    %cst = arith.constant dense<0.000000e+00> : vector<8x1024xf32>
    %7 = tpu.matmul %5, %6, %cst {dimension_numbers = #tpu.dot_dimension_numbers<[1], [0], [0], [1], [0, 0, 1, 1], [], []>} : vector<8x768xbf16>, vector<768x1024xbf16>, vector<8x1024xf32> -> vector<8x1024xf32>
    %c0_5 = arith.constant 0 : index
    %c0_6 = arith.constant 0 : index
    %8 = vector.load %arg3[%c0_5, %c0_6] : memref<1x1024xf32, #tpu.memory_space<vmem>>, vector<1x1024xf32>
    %9 = vector.broadcast %8 : vector<1x1024xf32> to vector<8x1024xf32>
    %10 = arith.addf %7, %9 : vector<8x1024xf32>
    %c0_7 = arith.constant 0 : index
    %c0_8 = arith.constant 0 : index
    %11 = vector.load %arg4[%c0_7, %c0_8] : memref<8x1024xf32, #tpu.memory_space<vmem>>, vector<8x1024xf32>
    tpu.vector_store %arg4[%c0_7, %c0_8], %10 {strides = array<i32>} : memref<8x1024xf32, #tpu.memory_space<vmem>>, vector<8x1024xf32>,
    return
  }
}

</mosaic_0001>

<bundles_post_ra>
// kernel: transfer_model_forward.1
= control target key start
LH: loop header
LB: loop body
LE: loop exit
PB: predicated region body
PF: predicated region fallthrough
CT: control target
= control target key end

     0   :  { %v31_v45 = vlaneseq  ;;  %s4674_s2 = inlined_call_operand.vmem [shape: bf16[768,1024], index: 2, kind: input, shape index: {}]   ;;  %s4675_s0 = inlined_call_operand.vmem [shape: f32[8,768], index: 0, kind: input, shape index: {}]   ;;  %s4676_s1 = inlined_call_operand.vmem [shape: f32[1,768], index: 1, kind: input, shape index: {}]   ;;  %s4677_s3 = inlined_call_operand.vmem [shape: f32[1,1024], index: 3, kind: input, shape index: {}]   ;;  %s4678_s4 = inlined_call_operand.vmem [shape: f32[8,1024], index: 4, kind: output, shape index: {}]  }
   0x1   :  { %v73_v0 = vld [vmem:[%s4674_s2] sm:$0xff]  ;;  %v74_v2 = vld [vmem:[%s4674_s2 + $0x8] sm:$0xff] }
   0x2   :  { %v77_v1 = vld [vmem:[%s4674_s2 + $0x20] sm:$0xff]  ;;  %v78_v4 = vld [vmem:[%s4674_s2 + $0x28] sm:$0xff]  ;;  %v3471_v55 = vshrl.u32 %v31_v45, 7 }
   0x3   :  { %v2924_v3 = vcombine.high %v73_v0, %v77_v1  ;;  %v2923_v5 = vcombine.low %v73_v0, %v77_v1  ;;  %v81_v6 = vld [vmem:[%s4674_s2 + $0x40] sm:$0xff]  ;;  %v2926_v8 = vcombine.high %v74_v2, %v78_v4  ;;  %v2925_v9 = vcombine.low %v74_v2, %v78_v4  ;;  %v82_v11 = vld [vmem:[%s4674_s2 + $0x48] sm:$0xff] }
   0x4   :  { %v85_v7 = vld [vmem:[%s4674_s2 + $0x60] sm:$0xff]  ;;  %v86_v12 = vld [vmem:[%s4674_s2 + $0x68] sm:$0xff]  ;;  %v37_v0 = vsub.s32 1, %v3471_v55 }
   0x5   :  { %v2932_v10 = vcombine.high %v81_v6, %v85_v7  ;;  %v89_v13 = vld [vmem:[%s4674_s2 + $0x80] sm:$0xff]  ;;  %2419 = vmatprep.subr.bf16.mxu0 %v2924_v3  ;;  %v2934_v14 = vcombine.high %v82_v11, %v86_v12  ;;  %v90_v16 = vld [vmem:[%s4674_s2 + $0x88] sm:$0xff]  ;;  %2542 = vmatprep.subr.bf16.mxu1 %v2926_v8  ;;  %v2931_v18 = vcombine.low %v81_v6, %v85_v7 }
   0x6   :  { %v93_v15 = vld [vmem:[%s4674_s2 + $0xa0] sm:$0xff]  ;;  %v94_v17 = vld [vmem:[%s4674_s2 + $0xa8] sm:$0xff]  ;;  %2420 = vmatpush1.bf16.msra.mxu0 %v2923_v5  ;;  %2543 = vmatpush1.bf16.msra.mxu1 %v2925_v9  ;;  %v2933_v19 = vcombine.low %v82_v11, %v86_v12 }
   0x7   :  { %2421 = vmatprep.subr.bf16.mxu0 %v2932_v10  ;;  %v2940_v20 = vcombine.high %v89_v13, %v93_v15  ;;  %2544 = vmatprep.subr.bf16.mxu1 %v2934_v14  ;;  %v2942_v21 = vcombine.high %v90_v16, %v94_v17  ;;  %v97_v22 = vld [vmem:[%s4674_s2 + $0xc0] sm:$0xff]  ;;  %v98_v24 = vld [vmem:[%s4674_s2 + $0xc8] sm:$0xff]  ;;  %v2939_v26 = vcombine.low %v89_v13, %v93_v15 }
   0x8   :  { %v101_v23 = vld [vmem:[%s4674_s2 + $0xe0] sm:$0xff]  ;;  %v102_v25 = vld [vmem:[%s4674_s2 + $0xe8] sm:$0xff]  ;;  %v2941_v27 = vcombine.low %v90_v16, %v94_v17 }
   0x9   :  { %v2948_v28 = vcombine.high %v97_v22, %v101_v23  ;;  %v2950_v29 = vcombine.high %v98_v24, %v102_v25  ;;  %v105_v30 = vld [vmem:[%s4674_s2 + $0x100] sm:$0xff]  ;;  %v106_v32 = vld [vmem:[%s4674_s2 + $0x108] sm:$0xff]  ;;  %v2947_v34 = vcombine.low %v97_v22, %v101_v23  ;;  %v2949_v35 = vcombine.low %v98_v24, %v102_v25 }
   0xa   :  { %2422 = vmatpush1.bf16.msra.mxu0 %v2931_v18  ;;  %2545 = vmatpush1.bf16.msra.mxu1 %v2933_v19  ;;  %v109_v31 = vld [vmem:[%s4674_s2 + $0x120] sm:$0xff]  ;;  %v110_v33 = vld [vmem:[%s4674_s2 + $0x128] sm:$0xff] }
   0xb   :  { %2423 = vmatprep.subr.bf16.mxu0 %v2940_v20  ;;  %2546 = vmatprep.subr.bf16.mxu1 %v2942_v21  ;;  %v2956_v36 = vcombine.high %v105_v30, %v109_v31  ;;  %v2958_v37 = vcombine.high %v106_v32, %v110_v33  ;;  %v113_v38 = vld [vmem:[%s4674_s2 + $0x140] sm:$0xff]  ;;  %v114_v40 = vld [vmem:[%s4674_s2 + $0x148] sm:$0xff]  ;;  %v2955_v42 = vcombine.low %v105_v30, %v109_v31 }
   0xc   :  { %v117_v39 = vld [vmem:[%s4674_s2 + $0x160] sm:$0xff]  ;;  %v118_v41 = vld [vmem:[%s4674_s2 + $0x168] sm:$0xff]  ;;  %v2957_v43 = vcombine.low %v106_v32, %v110_v33 }
   0xd   :  { %v2964_v44 = vcombine.high %v113_v38, %v117_v39  ;;  %v2966_v46 = vcombine.high %v114_v40, %v118_v41  ;;  %v121_v47 = vld [vmem:[%s4674_s2 + $0x180] sm:$0xff]  ;;  %v122_v49 = vld [vmem:[%s4674_s2 + $0x188] sm:$0xff]  ;;  %v2963_v51 = vcombine.low %v113_v38, %v117_v39  ;;  %v2965_v52 = vcombine.low %v114_v40, %v118_v41 }
   0xe   :  { %2424 = vmatpush1.bf16.msra.mxu0 %v2939_v26  ;;  %2547 = vmatpush1.bf16.msra.mxu1 %v2941_v27  ;;  %v125_v48 = vld [vmem:[%s4674_s2 + $0x1a0] sm:$0xff]  ;;  %v126_v50 = vld [vmem:[%s4674_s2 + $0x1a8] sm:$0xff] }
   0xf   :  { %2425 = vmatprep.subr.bf16.mxu0 %v2948_v28  ;;  %2548 = vmatprep.subr.bf16.mxu1 %v2950_v29  ;;  %v2972_v53 = vcombine.high %v121_v47, %v125_v48  ;;  %v18_v54 = vld [vmem:[%s4675_s0 + $0x8] sm:$0xff]  ;;  %v2974_v56 = vcombine.high %v122_v49, %v126_v50  ;;  %v129_v57 = vld [vmem:[%s4674_s2 + $0x1c0] sm:$0xff]  ;;  %v2971_v61 = vcombine.low %v121_v47, %v125_v48  ;;  %v19_v47 = vld [vmem:[%s4675_s0 + $0x10] sm:$0xff] }
  0x10   :  { %v133_v58 = vld [vmem:[%s4674_s2 + $0x1e0] sm:$0xff]  ;;  %3347 = vtanh.f32 %v18_v54  ;;  %v130_v59 = vld [vmem:[%s4674_s2 + $0x1c8] sm:$0xff]  ;;  %v2973_v62 = vcombine.low %v122_v49, %v126_v50 }
  0x11   :  { %v134_v60 = vld [vmem:[%s4674_s2 + $0x1e8] sm:$0xff]  ;;  %v2980_v63 = vcombine.high %v129_v57, %v133_v58  ;;  %v137_v2 = vld [vmem:[%s4674_s2 + $0x200] sm:$0xff]  ;;  %v2979_v7 = vcombine.low %v129_v57, %v133_v58  ;;  %v41_v58 = vsub.s32 2, %v3471_v55 }
  0x12   :  { %2426 = vmatpush1.bf16.msra.mxu0 %v2947_v34  ;;  %2549 = vmatpush1.bf16.msra.mxu1 %v2949_v35  ;;  %v2982_v1 = vcombine.high %v130_v59, %v134_v60  ;;  %v141_v3 = vld [vmem:[%s4674_s2 + $0x220] sm:$0xff]  ;;  %v138_v5 = vld [vmem:[%s4674_s2 + $0x208] sm:$0xff]  ;;  %v2981_v8 = vcombine.low %v130_v59, %v134_v60 }
  0x13   :  { %2427 = vmatprep.subr.bf16.mxu0 %v2956_v36  ;;  %2550 = vmatprep.subr.bf16.mxu1 %v2958_v37  ;;  %v3495_v4 = vld [vmem:[%s4676_s1] sm:$0x3f]  ;;  %v142_v6 = vld [vmem:[%s4674_s2 + $0x228] sm:$0xff]  ;;  %v2988_v9 = vcombine.high %v137_v2, %v141_v3  ;;  %v2987_v17 = vcombine.low %v137_v2, %v141_v3 }
  0x14   :  { %v38_v10 = vrot.slane %v3495_v4, %v37_v0  ;;  %v2990_v11 = vcombine.high %v138_v5, %v142_v6  ;;  %v145_v12 = vld [vmem:[%s4674_s2 + $0x240] sm:$0xff]  ;;  %v146_v14 = vld [vmem:[%s4674_s2 + $0x248] sm:$0xff]  ;;  %v2989_v18 = vcombine.low %v138_v5, %v142_v6  ;;  %v42_v6 = vrot.slane %v3495_v4, %v41_v58 }
  0x15   :  { %v149_v13 = vld [vmem:[%s4674_s2 + $0x260] sm:$0xff]  ;;  %v150_v15 = vld [vmem:[%s4674_s2 + $0x268] sm:$0xff] }
  0x16   :  { %2428 = vmatpush1.bf16.msra.mxu0 %v2955_v42  ;;  %2551 = vmatpush1.bf16.msra.mxu1 %v2957_v43  ;;  %v2996_v19 = vcombine.high %v145_v12, %v149_v13  ;;  %v2998_v21 = vcombine.high %v146_v14, %v150_v15  ;;  %v153_v22 = vld [vmem:[%s4674_s2 + $0x280] sm:$0xff]  ;;  %v154_v24 = vld [vmem:[%s4674_s2 + $0x288] sm:$0xff]  ;;  %v2995_v27 = vcombine.low %v145_v12, %v149_v13 }
  0x17   :  { %2429 = vmatprep.subr.bf16.mxu0 %v2964_v44  ;;  %2552 = vmatprep.subr.bf16.mxu1 %v2966_v46  ;;  %v157_v23 = vld [vmem:[%s4674_s2 + $0x2a0] sm:$0xff]  ;;  %v158_v25 = vld [vmem:[%s4674_s2 + $0x2a8] sm:$0xff]  ;;  %v2997_v28 = vcombine.low %v146_v14, %v150_v15 }
  0x18   :  { %v3004_v29 = vcombine.high %v153_v22, %v157_v23  ;;  %v3006_v30 = vcombine.high %v154_v24, %v158_v25  ;;  %v161_v31 = vld [vmem:[%s4674_s2 + $0x2c0] sm:$0xff]  ;;  %v162_v33 = vld [vmem:[%s4674_s2 + $0x2c8] sm:$0xff]  ;;  %v3003_v35 = vcombine.low %v153_v22, %v157_v23  ;;  %v3005_v36 = vcombine.low %v154_v24, %v158_v25 }
  0x19   :  { %v165_v32 = vld [vmem:[%s4674_s2 + $0x2e0] sm:$0xff]  ;;  %v166_v34 = vld [vmem:[%s4674_s2 + $0x2e8] sm:$0xff] }
  0x1a   :  { %2430 = vmatpush1.bf16.msra.mxu0 %v2963_v51  ;;  %2553 = vmatpush1.bf16.msra.mxu1 %v2965_v52  ;;  %v3348_v16 = vpop.eup %3347  ;;  %v3012_v37 = vcombine.high %v161_v31, %v165_v32  ;;  %v3014_v38 = vcombine.high %v162_v33, %v166_v34  ;;  %v169_v39 = vld [vmem:[%s4674_s2 + $0x300] sm:$0xff]  ;;  %v170_v42 = vld [vmem:[%s4674_s2 + $0x308] sm:$0xff]  ;;  %v3011_v44 = vcombine.low %v161_v31, %v165_v32  ;;  %v20_v51 = vld [vmem:[%s4675_s0 + $0x18] sm:$0xff] }
  0x1b   :  { %2431 = vmatprep.subr.bf16.mxu0 %v2972_v53  ;;  %2554 = vmatprep.subr.bf16.mxu1 %v2974_v56  ;;  %v62_v20 = vadd.f32 %v3348_v16, %v38_v10  ;;  %v173_v40 = vld [vmem:[%s4674_s2 + $0x320] sm:$0xff]  ;;  %v174_v43 = vld [vmem:[%s4674_s2 + $0x328] sm:$0xff]  ;;  %v3013_v45 = vcombine.low %v162_v33, %v166_v34  ;;  %v45_v10 = vsub.s32 3, %v3471_v55 }
  0x1c   :  { %v17_v41 = vld [vmem:[%s4675_s0] sm:$0xff]  ;;  %v3020_v46 = vcombine.high %v169_v39, %v173_v40  ;;  %v3022_v48 = vcombine.high %v170_v42, %v174_v43  ;;  %v178_v52 = vld [vmem:[%s4674_s2 + $0x348] sm:$0xff]  ;;  %v3019_v54 = vcombine.low %v169_v39, %v173_v40  ;;  %v3021_v56 = vcombine.low %v170_v42, %v174_v43 }
  0x1d   :  { %v3530_v26 = vpack.c.bf16 %v62_v20, %v62_v20  ;;  %3349 = vtanh.f32 %v17_v41  ;;  %v177_v49 = vld [vmem:[%s4674_s2 + $0x340] sm:$0xff]  ;;  %v182_v53 = vld [vmem:[%s4674_s2 + $0x368] sm:$0xff]  ;;  %v46_v23 = vrot.slane %v3495_v4, %v45_v10 }
  0x1e   :  { %2432 = vmatpush1.bf16.msra.mxu0 %v2971_v61  ;;  %2555 = vmatpush1.bf16.msra.mxu1 %v2973_v62  ;;  %v181_v50 = vld [vmem:[%s4674_s2 + $0x360] sm:$0xff]  ;;  %3351 = vtanh.f32 %v19_v47  ;;  %v3030_v59 = vcombine.high %v178_v52, %v182_v53  ;;  %v186_v62 = vld [vmem:[%s4674_s2 + $0x388] sm:$0xff]  ;;  %v3029_v3 = vcombine.low %v178_v52, %v182_v53  ;;  %v53_v53 = vsub.s32 5, %v3471_v55 }
  0x1f   :  { %2433 = vmatprep.subr.bf16.mxu0 %v2980_v63  ;;  %2556 = vmatprep.subr.bf16.mxu1 %v2982_v1  ;;  %v3028_v57 = vcombine.high %v177_v49, %v181_v50  ;;  %3353 = vtanh.f32 %v20_v51  ;;  %v185_v60 = vld [vmem:[%s4674_s2 + $0x380] sm:$0xff]  ;;  %v190_v63 = vld [vmem:[%s4674_s2 + $0x3a8] sm:$0xff]  ;;  %v33_v1 = vsub.s32 0, %v3471_v55  ;;  %v3027_v2 = vcombine.low %v177_v49, %v181_v50 }
  0x20   :  { %2451 = vmatprep.mubr.bf16.mxu0 %v3530_v26  ;;  %2574 = vmatprep.mubr.bf16.mxu1 %v3530_v26  ;;  %v189_v61 = vld [vmem:[%s4674_s2 + $0x3a0] sm:$0xff]  ;;  %v194_v12 = vld [vmem:[%s4674_s2 + $0x3c8] sm:$0xff] }
  0x21   :  { %v3036_v5 = vcombine.high %v185_v60, %v189_v61  ;;  %v198_v13 = vld [vmem:[%s4674_s2 + $0x3e8] sm:$0xff]  ;;  %v34_v14 = vrot.slane %v3495_v4, %v33_v1  ;;  %v3035_v16 = vcombine.low %v185_v60, %v189_v61  ;;  %v205_v22 = vld [vmem:[%s4674_s2 + $0x420] sm:$0xff] }
  0x22   :  { %2434 = vmatpush1.bf16.msra.mxu0 %v2979_v7  ;;  %2557 = vmatpush1.bf16.msra.mxu1 %v2981_v8  ;;  %v3038_v7 = vcombine.high %v186_v62, %v190_v63  ;;  %v193_v8 = vld [vmem:[%s4674_s2 + $0x3c0] sm:$0xff]  ;;  %v3046_v20 = vcombine.high %v194_v12, %v198_v13  ;;  %v202_v25 = vld [vmem:[%s4674_s2 + $0x408] sm:$0xff] }
  0x23   :  { %2435 = vmatprep.subr.bf16.mxu0 %v2988_v9  ;;  %2558 = vmatprep.subr.bf16.mxu1 %v2990_v11  ;;  %v197_v9 = vld [vmem:[%s4674_s2 + $0x3e0] sm:$0xff]  ;;  %v22_v42 = vld [vmem:[%s4675_s0 + $0x28] sm:$0xff] }
  0x24   :  { %v209_v33 = vld [vmem:[%s4674_s2 + $0x440] sm:$0xff]  ;;  %3355 = vtanh.f32 %v22_v42  ;;  %v222_v49 = vld [vmem:[%s4674_s2 + $0x4a8] sm:$0xff] }
  0x25   :  { %v213_v34 = vld [vmem:[%s4674_s2 + $0x460] sm:$0xff]  ;;  %v226_v60 = vld [vmem:[%s4674_s2 + $0x4c8] sm:$0xff] }
  0x26   :  { %2436 = vmatpush1.bf16.msra.mxu0 %v2987_v17  ;;  %2559 = vmatpush1.bf16.msra.mxu1 %v2989_v18  ;;  %v3037_v17 = vcombine.low %v186_v62, %v190_v63  ;;  %v3044_v18 = vcombine.high %v193_v8, %v197_v9  ;;  %v3060_v41 = vcombine.high %v209_v33, %v213_v34  ;;  %v21_v47 = vld [vmem:[%s4675_s0 + $0x20] sm:$0xff]  ;;  %v230_v61 = vld [vmem:[%s4674_s2 + $0x4e8] sm:$0xff] }
  0x27   :  { %2437 = vmatprep.subr.bf16.mxu0 %v2996_v19  ;;  %2560 = vmatprep.subr.bf16.mxu1 %v2998_v21  ;;  %v3350_v11 = vpop.eup %3349  ;;  %v201_v21 = vld [vmem:[%s4674_s2 + $0x400] sm:$0xff]  ;;  %3357 = vtanh.f32 %v21_v47  ;;  %v3059_v50 = vcombine.low %v209_v33, %v213_v34 }
  0x28   :  { %v3352_v15 = vpop.eup %3351  ;;  %v3052_v31 = vcombine.high %v201_v21, %v205_v22  ;;  %v3051_v39 = vcombine.low %v201_v21, %v205_v22  ;;  %v242_v22 = vld [vmem:[%s4674_s2 + $0x548] sm:$0xff]  ;;  %v265_v47 = vld [vmem:[%s4674_s2 + $0x600] sm:$0xff] }
  0x29   :  { %v3612_v19 = vadd.f32 %v3352_v15, %v42_v6  ;;  %v3354_v24 = vpop.eup %3353  ;;  %v233_v6 = vld [vmem:[%s4674_s2 + $0x500] sm:$0xff]  ;;  %v3077_v15 = vcombine.low %v226_v60, %v230_v61 }
  0x2a   :  { %2438 = vmatpush1.bf16.msra.mxu0 %v2995_v27  ;;  %2561 = vmatpush1.bf16.msra.mxu1 %v2997_v28  ;;  %v206_v27 = vld [vmem:[%s4674_s2 + $0x428] sm:$0xff]  ;;  %v61_v28 = vadd.f32 %v3350_v11, %v34_v14 }
  0x2b   :  { %2439 = vmatprep.subr.bf16.mxu0 %v3004_v29  ;;  %2562 = vmatprep.subr.bf16.mxu1 %v3006_v30  ;;  %v3043_v29 = vcombine.low %v193_v8, %v197_v9  ;;  %v3045_v30 = vcombine.low %v194_v12, %v198_v13  ;;  %v3054_v32 = vcombine.high %v202_v25, %v206_v27  ;;  %v234_v9 = vld [vmem:[%s4674_s2 + $0x508] sm:$0xff] }
  0x2c   :  { %v3053_v40 = vcombine.low %v202_v25, %v206_v27  ;;  %v238_v11 = vld [vmem:[%s4674_s2 + $0x528] sm:$0xff] }
  0x2d   :  { %v3085_v25 = vcombine.low %v234_v9, %v238_v11 }
  0x2e   :  { %2440 = vmatpush1.bf16.msra.mxu0 %v3003_v35  ;;  %2563 = vmatpush1.bf16.msra.mxu1 %v3005_v36  ;;  %v64_v35 = vadd.f32 %v3354_v24, %v46_v23  ;;  %v3635_v36 = vpack.c.bf16 %v61_v28, %v61_v28  ;;  %v3356_v12 = vpop.eup %3355  ;;  %v246_v23 = vld [vmem:[%s4674_s2 + $0x568] sm:$0xff] }
  0x2f   :  { %2441 = vmatprep.subr.bf16.mxu0 %v3012_v37  ;;  %2564 = vmatprep.subr.bf16.mxu1 %v3014_v38  ;;  %v210_v37 = vld [vmem:[%s4674_s2 + $0x448] sm:$0xff]  ;;  %v3094_v28 = vcombine.high %v242_v22, %v246_v23  ;;  %v3093_v34 = vcombine.low %v242_v22, %v246_v23 }
  0x30   :  { %v214_v38 = vld [vmem:[%s4674_s2 + $0x468] sm:$0xff] }
  0x31   :  { %v3062_v43 = vcombine.high %v210_v37, %v214_v38  ;;  %v3061_v51 = vcombine.low %v210_v37, %v214_v38  ;;  %v3358_v14 = vpop.eup %3357  ;;  %v257_v38 = vld [vmem:[%s4674_s2 + $0x5c0] sm:$0xff] }
  0x32   :  { %2442 = vmatpush1.bf16.msra.mxu0 %v3011_v44  ;;  %2565 = vmatpush1.bf16.msra.mxu1 %v3013_v45  ;;  %v217_v44 = vld [vmem:[%s4674_s2 + $0x480] sm:$0xff] }
  0x33   :  { %2443 = vmatprep.subr.bf16.mxu0 %v3020_v46  ;;  %2566 = vmatprep.subr.bf16.mxu1 %v3022_v48  ;;  %v221_v45 = vld [vmem:[%s4674_s2 + $0x4a0] sm:$0xff]  ;;  %v3652_v46 = vpack.c.bf16 %v64_v35, %v64_v35  ;;  %v218_v48 = vld [vmem:[%s4674_s2 + $0x488] sm:$0xff] }
  0x34   :  { %v3068_v52 = vcombine.high %v217_v44, %v221_v45  ;;  %v3067_v62 = vcombine.low %v217_v44, %v221_v45  ;;  %v3069_v63 = vcombine.low %v218_v48, %v222_v49 }
  0x36   :  { %2444 = vmatpush1.bf16.msra.mxu0 %v3019_v54  ;;  %2567 = vmatpush1.bf16.msra.mxu1 %v3021_v56  ;;  %v3070_v54 = vcombine.high %v218_v48, %v222_v49  ;;  %v225_v56 = vld [vmem:[%s4674_s2 + $0x4c0] sm:$0xff]  ;;  %v266_v49 = vld [vmem:[%s4674_s2 + $0x608] sm:$0xff] }
  0x37   :  { %2445 = vmatprep.subr.bf16.mxu0 %v3028_v57  ;;  %2568 = vmatprep.subr.bf16.mxu1 %v3030_v59  ;;  %v229_v57 = vld [vmem:[%s4674_s2 + $0x4e0] sm:$0xff]  ;;  %v49_v59 = vsub.s32 4, %v3471_v55 }
  0x38   :  { %v3075_v13 = vcombine.low %v225_v56, %v229_v57  ;;  %v269_v48 = vld [vmem:[%s4674_s2 + $0x620] sm:$0xff] }
  0x39   :  { %v50_v8 = vrot.slane %v3495_v4, %v49_v59 }
  0x3a   :  { %2446 = vmatpush1.bf16.msra.mxu0 %v3027_v2  ;;  %2569 = vmatpush1.bf16.msra.mxu1 %v3029_v3  ;;  %v3076_v2 = vcombine.high %v225_v56, %v229_v57  ;;  %v54_v3 = vrot.slane %v3495_v4, %v53_v53  ;;  %v3086_v4 = vcombine.high %v234_v9, %v238_v11  ;;  %v273_v57 = vld [vmem:[%s4674_s2 + $0x640] sm:$0xff]  ;;  %v286_v9 = vld [vmem:[%s4674_s2 + $0x6a8] sm:$0xff] }
  0x3b   :  { %2447 = vmatprep.subr.bf16.mxu0 %v3036_v5  ;;  %2570 = vmatprep.subr.bf16.mxu1 %v3038_v7  ;;  %v3078_v5 = vcombine.high %v226_v60, %v230_v61  ;;  %v237_v7 = vld [vmem:[%s4674_s2 + $0x520] sm:$0xff]  ;;  %v3707_v21 = vadd.f32 %v3358_v14, %v50_v8  ;;  %v274_v61 = vld [vmem:[%s4674_s2 + $0x648] sm:$0xff] }
  0x3c   :  { %v3083_v24 = vcombine.low %v233_v6, %v237_v7  ;;  %v277_v60 = vld [vmem:[%s4674_s2 + $0x660] sm:$0xff]  ;;  %v282_v8 = vld [vmem:[%s4674_s2 + $0x688] sm:$0xff] }
  0x3d   :  { %v3123_v11 = vcombine.low %v273_v57, %v277_v60  ;;  %v3134_v14 = vcombine.high %v282_v8, %v286_v9  ;;  %v3133_v22 = vcombine.low %v282_v8, %v286_v9 }
  0x3e   :  { %2448 = vmatpush1.bf16.msra.mxu0 %v3035_v16  ;;  %2571 = vmatpush1.bf16.msra.mxu1 %v3037_v17  ;;  %v3084_v16 = vcombine.high %v233_v6, %v237_v7  ;;  %v3699_v17 = vadd.f32 %v3356_v12, %v54_v3  ;;  %v3124_v3 = vcombine.high %v273_v57, %v277_v60  ;;  %v281_v6 = vld [vmem:[%s4674_s2 + $0x680] sm:$0xff]  ;;  %v326_v57 = vld [vmem:[%s4674_s2 + $0x7e8] sm:$0xff] }
  0x3f   :  { %2449 = vmatprep.subr.bf16.mxu0 %v3044_v18  ;;  %2572 = vmatprep.subr.bf16.mxu1 %v3046_v20  ;;  %v241_v18 = vld [vmem:[%s4674_s2 + $0x540] sm:$0xff] }
  0x40   :  { %v245_v20 = vld [vmem:[%s4674_s2 + $0x560] sm:$0xff] }
  0x41   :  { %v3092_v27 = vcombine.high %v241_v18, %v245_v20  ;;  %v3091_v33 = vcombine.low %v241_v18, %v245_v20  ;;  %v285_v7 = vld [vmem:[%s4674_s2 + $0x6a0] sm:$0xff]  ;;  %v294_v18 = vld [vmem:[%s4674_s2 + $0x6e8] sm:$0xff] }
  0x42   :  { %2450 = vmatpush1.bf16.msra.mxu0 %v3043_v29  ;;  %2573 = vmatpush1.bf16.msra.mxu1 %v3045_v30  ;;  %v249_v29 = vld [vmem:[%s4674_s2 + $0x580] sm:$0xff]  ;;  %v3131_v20 = vcombine.low %v281_v6, %v285_v7 }
  0x43   :  { %2460 = vmatprep.subr.bf16.mxu0 %v3052_v31  ;;  %2583 = vmatprep.subr.bf16.mxu1 %v3054_v32  ;;  %v253_v30 = vld [vmem:[%s4674_s2 + $0x5a0] sm:$0xff]  ;;  %v250_v31 = vld [vmem:[%s4674_s2 + $0x588] sm:$0xff] }
  0x44   :  { %v254_v32 = vld [vmem:[%s4674_s2 + $0x5a8] sm:$0xff]  ;;  %v3100_v35 = vcombine.high %v249_v29, %v253_v30  ;;  %v3099_v42 = vcombine.low %v249_v29, %v253_v30 }
  0x45   :  { %2452 = vmatmul.mubr.bf16.vlgmr.msra.gmra.mrb[0].mxu0 %v3635_v36  ;;  %2575 = vmatmul.mubr.bf16.vlgmr.msra.gmra.mrb[0].mxu1 %v3635_v36  ;;  %v3102_v37 = vcombine.high %v250_v31, %v254_v32  ;;  %v302_v29 = vld [vmem:[%s4674_s2 + $0x728] sm:$0xff] }
  0x46   :  { %2461 = vmatpush1.bf16.msra.mxu0 %v3051_v39  ;;  %2584 = vmatpush1.bf16.msra.mxu1 %v3053_v40  ;;  %v261_v39 = vld [vmem:[%s4674_s2 + $0x5e0] sm:$0xff]  ;;  %v258_v40 = vld [vmem:[%s4674_s2 + $0x5c8] sm:$0xff] }
  0x47   :  { %2462 = vmatprep.subr.bf16.mxu0 %v3060_v41  ;;  %2585 = vmatprep.subr.bf16.mxu1 %v3062_v43  ;;  %v262_v41 = vld [vmem:[%s4674_s2 + $0x5e8] sm:$0xff]  ;;  %v3101_v43 = vcombine.low %v250_v31, %v254_v32  ;;  %v3108_v44 = vcombine.high %v257_v38, %v261_v39 }
  0x48   :  { %2492 = vmatprep.mubr.bf16.mxu0 %v3652_v46  ;;  %2615 = vmatprep.mubr.bf16.mxu1 %v3652_v46  ;;  %v3110_v45 = vcombine.high %v258_v40, %v262_v41 }
  0x4a   :  { %2463 = vmatpush1.bf16.msra.mxu0 %v3059_v50  ;;  %2586 = vmatpush1.bf16.msra.mxu1 %v3061_v51  ;;  %v270_v50 = vld [vmem:[%s4674_s2 + $0x628] sm:$0xff]  ;;  %v3107_v51 = vcombine.low %v257_v38, %v261_v39 }
  0x4b   :  { %2464 = vmatprep.subr.bf16.mxu0 %v3068_v52  ;;  %2587 = vmatprep.subr.bf16.mxu1 %v3070_v54  ;;  %v3109_v52 = vcombine.low %v258_v40, %v262_v41  ;;  %v3116_v54 = vcombine.high %v265_v47, %v269_v48  ;;  %v3118_v56 = vcombine.high %v266_v49, %v270_v50  ;;  %v310_v38 = vld [vmem:[%s4674_s2 + $0x768] sm:$0xff] }
  0x4e   :  { %2465 = vmatpush1.bf16.msra.mxu0 %v3067_v62  ;;  %2588 = vmatpush1.bf16.msra.mxu1 %v3069_v63  ;;  %v278_v62 = vld [vmem:[%s4674_s2 + $0x668] sm:$0xff]  ;;  %v3115_v63 = vcombine.low %v265_v47, %v269_v48 }
  0x4f   :  { %2466 = vmatprep.subr.bf16.mxu0 %v3076_v2  ;;  %2589 = vmatprep.subr.bf16.mxu1 %v3078_v5  ;;  %v3117_v2 = vcombine.low %v266_v49, %v270_v50  ;;  %v3126_v5 = vcombine.high %v274_v61, %v278_v62  ;;  %v3125_v12 = vcombine.low %v274_v61, %v278_v62  ;;  %v318_v47 = vld [vmem:[%s4674_s2 + $0x7a8] sm:$0xff] }
  0x52   :  { %2467 = vmatpush1.bf16.msra.mxu0 %v3075_v13  ;;  %2590 = vmatpush1.bf16.msra.mxu1 %v3077_v15  ;;  %v3132_v13 = vcombine.high %v281_v6, %v285_v7  ;;  %v289_v15 = vld [vmem:[%s4674_s2 + $0x6c0] sm:$0xff]  ;;  %v334_v6 = vld [vmem:[%s4674_s2 + $0x828] sm:$0xff] }
  0x53   :  { %2468 = vmatprep.subr.bf16.mxu0 %v3084_v16  ;;  %2591 = vmatprep.subr.bf16.mxu1 %v3086_v4  ;;  %v293_v16 = vld [vmem:[%s4674_s2 + $0x6e0] sm:$0xff]  ;;  %v290_v4 = vld [vmem:[%s4674_s2 + $0x6c8] sm:$0xff] }
  0x54   :  { %v3140_v23 = vcombine.high %v289_v15, %v293_v16  ;;  %v3139_v30 = vcombine.low %v289_v15, %v293_v16  ;;  %v3141_v31 = vcombine.low %v290_v4, %v294_v18  ;;  %v338_v15 = vld [vmem:[%s4674_s2 + $0x848] sm:$0xff] }
  0x55   :  { %v342_v16 = vld [vmem:[%s4674_s2 + $0x868] sm:$0xff] }
  0x56   :  { %2469 = vmatpush1.bf16.msra.mxu0 %v3083_v24  ;;  %2592 = vmatpush1.bf16.msra.mxu1 %v3085_v25  ;;  %v3142_v24 = vcombine.high %v290_v4, %v294_v18  ;;  %v297_v25 = vld [vmem:[%s4674_s2 + $0x700] sm:$0xff] }
  0x57   :  { %2470 = vmatprep.subr.bf16.mxu0 %v3092_v27  ;;  %2593 = vmatprep.subr.bf16.mxu1 %v3094_v28  ;;  %v301_v27 = vld [vmem:[%s4674_s2 + $0x720] sm:$0xff]  ;;  %v298_v28 = vld [vmem:[%s4674_s2 + $0x708] sm:$0xff] }
  0x58   :  { %v3148_v32 = vcombine.high %v297_v25, %v301_v27  ;;  %v3147_v39 = vcombine.low %v297_v25, %v301_v27  ;;  %v3149_v40 = vcombine.low %v298_v28, %v302_v29  ;;  %v346_v25 = vld [vmem:[%s4674_s2 + $0x888] sm:$0xff] }
  0x59   :  { %v350_v27 = vld [vmem:[%s4674_s2 + $0x8a8] sm:$0xff] }
  0x5a   :  { %2471 = vmatpush1.bf16.msra.mxu0 %v3091_v33  ;;  %2594 = vmatpush1.bf16.msra.mxu1 %v3093_v34  ;;  %v3150_v33 = vcombine.high %v298_v28, %v302_v29  ;;  %v305_v34 = vld [vmem:[%s4674_s2 + $0x740] sm:$0xff]  ;;  %v3189_v29 = vcombine.low %v338_v15, %v342_v16 }
  0x5b   :  { %2472 = vmatprep.subr.bf16.mxu0 %v3100_v35  ;;  %2595 = vmatprep.subr.bf16.mxu1 %v3102_v37  ;;  %v309_v35 = vld [vmem:[%s4674_s2 + $0x760] sm:$0xff]  ;;  %v306_v37 = vld [vmem:[%s4674_s2 + $0x748] sm:$0xff] }
  0x5c   :  { %v3156_v41 = vcombine.high %v305_v34, %v309_v35  ;;  %v3155_v48 = vcombine.low %v305_v34, %v309_v35  ;;  %v3157_v49 = vcombine.low %v306_v37, %v310_v38  ;;  %v358_v34 = vld [vmem:[%s4674_s2 + $0x8e8] sm:$0xff] }
  0x5e   :  { %2473 = vmatpush1.bf16.msra.mxu0 %v3099_v42  ;;  %2596 = vmatpush1.bf16.msra.mxu1 %v3101_v43  ;;  %v3158_v42 = vcombine.high %v306_v37, %v310_v38  ;;  %v313_v43 = vld [vmem:[%s4674_s2 + $0x780] sm:$0xff]  ;;  %v3197_v37 = vcombine.low %v346_v25, %v350_v27 }
  0x5f   :  { %2474 = vmatprep.subr.bf16.mxu0 %v3108_v44  ;;  %2597 = vmatprep.subr.bf16.mxu1 %v3110_v45  ;;  %v317_v44 = vld [vmem:[%s4674_s2 + $0x7a0] sm:$0xff]  ;;  %v314_v45 = vld [vmem:[%s4674_s2 + $0x788] sm:$0xff] }
  0x60   :  { %v3164_v50 = vcombine.high %v313_v43, %v317_v44  ;;  %v3163_v60 = vcombine.low %v313_v43, %v317_v44  ;;  %v3165_v61 = vcombine.low %v314_v45, %v318_v47  ;;  %v366_v43 = vld [vmem:[%s4674_s2 + $0x928] sm:$0xff] }
  0x62   :  { %2475 = vmatpush1.bf16.msra.mxu0 %v3107_v51  ;;  %2598 = vmatpush1.bf16.msra.mxu1 %v3109_v52  ;;  %v3166_v51 = vcombine.high %v314_v45, %v318_v47  ;;  %v321_v52 = vld [vmem:[%s4674_s2 + $0x7c0] sm:$0xff] }
  0x63   :  { %2476 = vmatprep.subr.bf16.mxu0 %v3116_v54  ;;  %2599 = vmatprep.subr.bf16.mxu1 %v3118_v56  ;;  %v325_v54 = vld [vmem:[%s4674_s2 + $0x7e0] sm:$0xff]  ;;  %v322_v56 = vld [vmem:[%s4674_s2 + $0x7c8] sm:$0xff] }
  0x64   :  { %v3172_v62 = vcombine.high %v321_v52, %v325_v54  ;;  %v3171_v7 = vcombine.low %v321_v52, %v325_v54  ;;  %v3173_v8 = vcombine.low %v322_v56, %v326_v57  ;;  %v374_v52 = vld [vmem:[%s4674_s2 + $0x968] sm:$0xff] }
  0x66   :  { %2477 = vmatpush1.bf16.msra.mxu0 %v3115_v63  ;;  %2600 = vmatpush1.bf16.msra.mxu1 %v3117_v2  ;;  %v3174_v63 = vcombine.high %v322_v56, %v326_v57  ;;  %v329_v2 = vld [vmem:[%s4674_s2 + $0x800] sm:$0xff] }
  0x67   :  { %2478 = vmatprep.subr.bf16.mxu0 %v3124_v3  ;;  %2601 = vmatprep.subr.bf16.mxu1 %v3126_v5  ;;  %v333_v3 = vld [vmem:[%s4674_s2 + $0x820] sm:$0xff]  ;;  %v330_v5 = vld [vmem:[%s4674_s2 + $0x808] sm:$0xff] }
  0x68   :  { %v3180_v9 = vcombine.high %v329_v2, %v333_v3  ;;  %v3179_v4 = vcombine.low %v329_v2, %v333_v3  ;;  %v3181_v18 = vcombine.low %v330_v5, %v334_v6  ;;  %v382_v2 = vld [vmem:[%s4674_s2 + $0x9a8] sm:$0xff] }
  0x6a   :  { %2479 = vmatpush1.bf16.msra.mxu0 %v3123_v11  ;;  %2602 = vmatpush1.bf16.msra.mxu1 %v3125_v12  ;;  %v3182_v11 = vcombine.high %v330_v5, %v334_v6  ;;  %v337_v12 = vld [vmem:[%s4674_s2 + $0x840] sm:$0xff] }
  0x6b   :  { %2480 = vmatprep.subr.bf16.mxu0 %v3132_v13  ;;  %2603 = vmatprep.subr.bf16.mxu1 %v3134_v14  ;;  %v341_v13 = vld [vmem:[%s4674_s2 + $0x860] sm:$0xff]  ;;  %v3855_v14 = vpack.c.bf16 %v3612_v19, %v3612_v19 }
  0x6c   :  { %v345_v19 = vld [vmem:[%s4674_s2 + $0x880] sm:$0xff]  ;;  %v3187_v28 = vcombine.low %v337_v12, %v341_v13 }
  0x6e   :  { %2481 = vmatpush1.bf16.msra.mxu0 %v3131_v20  ;;  %2604 = vmatpush1.bf16.msra.mxu1 %v3133_v22  ;;  %v3188_v20 = vcombine.high %v337_v12, %v341_v13  ;;  %v3190_v22 = vcombine.high %v338_v15, %v342_v16  ;;  %v390_v12 = vld [vmem:[%s4674_s2 + $0x9e8] sm:$0xff] }
  0x6f   :  { %2482 = vmatprep.subr.bf16.mxu0 %v3140_v23  ;;  %2605 = vmatprep.subr.bf16.mxu1 %v3142_v24  ;;  %v349_v23 = vld [vmem:[%s4674_s2 + $0x8a0] sm:$0xff]  ;;  %v3871_v24 = vpack.c.bf16 %v3699_v17, %v3699_v17  ;;  %v3198_v17 = vcombine.high %v346_v25, %v350_v27 }
  0x70   :  { %v3195_v35 = vcombine.low %v345_v19, %v349_v23 }
  0x72   :  { %2483 = vmatpush1.bf16.msra.mxu0 %v3139_v30  ;;  %2606 = vmatpush1.bf16.msra.mxu1 %v3141_v31  ;;  %v3196_v30 = vcombine.high %v345_v19, %v349_v23  ;;  %v353_v31 = vld [vmem:[%s4674_s2 + $0x8c0] sm:$0xff]  ;;  %v398_v19 = vld [vmem:[%s4674_s2 + $0xa28] sm:$0xff] }
  0x73   :  { %2484 = vmatprep.subr.bf16.mxu0 %v3148_v32  ;;  %2607 = vmatprep.subr.bf16.mxu1 %v3150_v33  ;;  %v357_v32 = vld [vmem:[%s4674_s2 + $0x8e0] sm:$0xff]  ;;  %v354_v33 = vld [vmem:[%s4674_s2 + $0x8c8] sm:$0xff] }
  0x74   :  { %v3204_v38 = vcombine.high %v353_v31, %v357_v32  ;;  %v3203_v44 = vcombine.low %v353_v31, %v357_v32  ;;  %v3205_v45 = vcombine.low %v354_v33, %v358_v34  ;;  %v406_v31 = vld [vmem:[%s4674_s2 + $0xa68] sm:$0xff] }
  0x76   :  { %2485 = vmatpush1.bf16.msra.mxu0 %v3147_v39  ;;  %2608 = vmatpush1.bf16.msra.mxu1 %v3149_v40  ;;  %v3206_v39 = vcombine.high %v354_v33, %v358_v34  ;;  %v361_v40 = vld [vmem:[%s4674_s2 + $0x900] sm:$0xff] }
  0x77   :  { %2486 = vmatprep.subr.bf16.mxu0 %v3156_v41  ;;  %2609 = vmatprep.subr.bf16.mxu1 %v3158_v42  ;;  %v365_v41 = vld [vmem:[%s4674_s2 + $0x920] sm:$0xff]  ;;  %v362_v42 = vld [vmem:[%s4674_s2 + $0x908] sm:$0xff] }
  0x78   :  { %v3212_v47 = vcombine.high %v361_v40, %v365_v41  ;;  %v3211_v54 = vcombine.low %v361_v40, %v365_v41  ;;  %v3213_v56 = vcombine.low %v362_v42, %v366_v43  ;;  %v414_v40 = vld [vmem:[%s4674_s2 + $0xaa8] sm:$0xff] }
  0x7a   :  { %2487 = vmatpush1.bf16.msra.mxu0 %v3155_v48  ;;  %2610 = vmatpush1.bf16.msra.mxu1 %v3157_v49  ;;  %v3214_v48 = vcombine.high %v362_v42, %v366_v43  ;;  %v369_v49 = vld [vmem:[%s4674_s2 + $0x940] sm:$0xff] }
  0x7b   :  { %2488 = vmatprep.subr.bf16.mxu0 %v3164_v50  ;;  %2611 = vmatprep.subr.bf16.mxu1 %v3166_v51  ;;  %v373_v50 = vld [vmem:[%s4674_s2 + $0x960] sm:$0xff]  ;;  %v370_v51 = vld [vmem:[%s4674_s2 + $0x948] sm:$0xff] }
  0x7c   :  { %v3220_v57 = vcombine.high %v369_v49, %v373_v50  ;;  %v3219_v3 = vcombine.low %v369_v49, %v373_v50  ;;  %v3221_v5 = vcombine.low %v370_v51, %v374_v52  ;;  %v422_v49 = vld [vmem:[%s4674_s2 + $0xae8] sm:$0xff] }
  0x7e   :  { %2489 = vmatpush1.bf16.msra.mxu0 %v3163_v60  ;;  %2612 = vmatpush1.bf16.msra.mxu1 %v3165_v61  ;;  %v3222_v60 = vcombine.high %v370_v51, %v374_v52  ;;  %v377_v61 = vld [vmem:[%s4674_s2 + $0x980] sm:$0xff] }
  0x7f   :  { %2490 = vmatprep.subr.bf16.mxu0 %v3172_v62  ;;  %2613 = vmatprep.subr.bf16.mxu1 %v3174_v63  ;;  %v381_v62 = vld [vmem:[%s4674_s2 + $0x9a0] sm:$0xff]  ;;  %v378_v63 = vld [vmem:[%s4674_s2 + $0x988] sm:$0xff] }
  0x80   :  { %v3228_v6 = vcombine.high %v377_v61, %v381_v62  ;;  %v3227_v13 = vcombine.low %v377_v61, %v381_v62  ;;  %v3229_v15 = vcombine.low %v378_v63, %v382_v2  ;;  %v430_v61 = vld [vmem:[%s4674_s2 + $0xb28] sm:$0xff] }
  0x82   :  { %2491 = vmatpush1.bf16.msra.mxu0 %v3171_v7  ;;  %2614 = vmatpush1.bf16.msra.mxu1 %v3173_v8  ;;  %v3230_v7 = vcombine.high %v378_v63, %v382_v2  ;;  %v385_v8 = vld [vmem:[%s4674_s2 + $0x9c0] sm:$0xff] }
  0x83   :  { %2501 = vmatprep.subr.bf16.mxu0 %v3180_v9  ;;  %2624 = vmatprep.subr.bf16.mxu1 %v3182_v11  ;;  %v389_v9 = vld [vmem:[%s4674_s2 + $0x9e0] sm:$0xff]  ;;  %v386_v11 = vld [vmem:[%s4674_s2 + $0x9c8] sm:$0xff] }
  0x84   :  { %v3236_v16 = vcombine.high %v385_v8, %v389_v9  ;;  %v3235_v23 = vcombine.low %v385_v8, %v389_v9  ;;  %v3237_v25 = vcombine.low %v386_v11, %v390_v12  ;;  %v438_v8 = vld [vmem:[%s4674_s2 + $0xb68] sm:$0xff] }
  0x85   :  { %2493 = vmatmul.mubr.bf16.vlgmr.msra.gmra.mrb[0].mxu0 %v3855_v14  ;;  %2616 = vmatmul.mubr.bf16.vlgmr.msra.gmra.mrb[0].mxu1 %v3855_v14 }
  0x86   :  { %2502 = vmatpush1.bf16.msra.mxu0 %v3179_v4  ;;  %2625 = vmatpush1.bf16.msra.mxu1 %v3181_v18  ;;  %v3238_v4 = vcombine.high %v386_v11, %v390_v12  ;;  %v393_v18 = vld [vmem:[%s4674_s2 + $0xa00] sm:$0xff] }
  0x87   :  { %2503 = vmatprep.subr.bf16.mxu0 %v3188_v20  ;;  %2626 = vmatprep.subr.bf16.mxu1 %v3190_v22  ;;  %v397_v20 = vld [vmem:[%s4674_s2 + $0xa20] sm:$0xff]  ;;  %v394_v22 = vld [vmem:[%s4674_s2 + $0xa08] sm:$0xff] }
  0x88   :  { %2533 = vmatprep.mubr.bf16.mxu0 %v3871_v24  ;;  %2656 = vmatprep.mubr.bf16.mxu1 %v3871_v24  ;;  %v3244_v27 = vcombine.high %v393_v18, %v397_v20  ;;  %v3243_v32 = vcombine.low %v393_v18, %v397_v20  ;;  %v3245_v33 = vcombine.low %v394_v22, %v398_v19  ;;  %v446_v18 = vld [vmem:[%s4674_s2 + $0xba8] sm:$0xff] }
  0x8a   :  { %2504 = vmatpush1.bf16.msra.mxu0 %v3187_v28  ;;  %2627 = vmatpush1.bf16.msra.mxu1 %v3189_v29  ;;  %v3246_v28 = vcombine.high %v394_v22, %v398_v19  ;;  %v401_v29 = vld [vmem:[%s4674_s2 + $0xa40] sm:$0xff] }
  0x8b   :  { %2505 = vmatprep.subr.bf16.mxu0 %v3196_v30  ;;  %2628 = vmatprep.subr.bf16.mxu1 %v3198_v17  ;;  %v405_v30 = vld [vmem:[%s4674_s2 + $0xa60] sm:$0xff]  ;;  %v402_v17 = vld [vmem:[%s4674_s2 + $0xa48] sm:$0xff] }
  0x8c   :  { %v3252_v34 = vcombine.high %v401_v29, %v405_v30  ;;  %v3251_v41 = vcombine.low %v401_v29, %v405_v30  ;;  %v3253_v42 = vcombine.low %v402_v17, %v406_v31  ;;  %v454_v29 = vld [vmem:[%s4674_s2 + $0xbe8] sm:$0xff] }
  0x8e   :  { %2506 = vmatpush1.bf16.msra.mxu0 %v3195_v35  ;;  %2629 = vmatpush1.bf16.msra.mxu1 %v3197_v37  ;;  %v3254_v35 = vcombine.high %v402_v17, %v406_v31  ;;  %v409_v37 = vld [vmem:[%s4674_s2 + $0xa80] sm:$0xff] }
  0x8f   :  { %2507 = vmatprep.subr.bf16.mxu0 %v3204_v38  ;;  %2630 = vmatprep.subr.bf16.mxu1 %v3206_v39  ;;  %v413_v38 = vld [vmem:[%s4674_s2 + $0xaa0] sm:$0xff]  ;;  %v410_v39 = vld [vmem:[%s4674_s2 + $0xa88] sm:$0xff] }
  0x90   :  { %v3260_v43 = vcombine.high %v409_v37, %v413_v38  ;;  %v3259_v50 = vcombine.low %v409_v37, %v413_v38  ;;  %v3261_v51 = vcombine.low %v410_v39, %v414_v40  ;;  %v80_v37 = vld [vmem:[%s4674_s2 + $0x38] sm:$0xff] }
  0x92   :  { %2508 = vmatpush1.bf16.msra.mxu0 %v3203_v44  ;;  %2631 = vmatpush1.bf16.msra.mxu1 %v3205_v45  ;;  %v3262_v44 = vcombine.high %v410_v39, %v414_v40  ;;  %v417_v45 = vld [vmem:[%s4674_s2 + $0xac0] sm:$0xff] }
  0x93   :  { %2509 = vmatprep.subr.bf16.mxu0 %v3212_v47  ;;  %2632 = vmatprep.subr.bf16.mxu1 %v3214_v48  ;;  %v421_v47 = vld [vmem:[%s4674_s2 + $0xae0] sm:$0xff]  ;;  %v418_v48 = vld [vmem:[%s4674_s2 + $0xac8] sm:$0xff] }
  0x94   :  { %v3268_v52 = vcombine.high %v417_v45, %v421_v47  ;;  %v3267_v62 = vcombine.low %v417_v45, %v421_v47  ;;  %v3269_v63 = vcombine.low %v418_v48, %v422_v49  ;;  %v84_v45 = vld [vmem:[%s4674_s2 + $0x58] sm:$0xff] }
  0x95   :  { %v88_v47 = vld [vmem:[%s4674_s2 + $0x78] sm:$0xff] }
  0x96   :  { %2510 = vmatpush1.bf16.msra.mxu0 %v3211_v54  ;;  %2633 = vmatpush1.bf16.msra.mxu1 %v3213_v56  ;;  %v3270_v54 = vcombine.high %v418_v48, %v422_v49  ;;  %v425_v56 = vld [vmem:[%s4674_s2 + $0xb00] sm:$0xff] }
  0x97   :  { %2511 = vmatprep.subr.bf16.mxu0 %v3220_v57  ;;  %2634 = vmatprep.subr.bf16.mxu1 %v3222_v60  ;;  %v429_v57 = vld [vmem:[%s4674_s2 + $0xb20] sm:$0xff]  ;;  %v426_v60 = vld [vmem:[%s4674_s2 + $0xb08] sm:$0xff] }
  0x98   :  { %v3276_v2 = vcombine.high %v425_v56, %v429_v57  ;;  %v3275_v9 = vcombine.low %v425_v56, %v429_v57  ;;  %v3277_v11 = vcombine.low %v426_v60, %v430_v61  ;;  %v96_v56 = vld [vmem:[%s4674_s2 + $0xb8] sm:$0xff] }
  0x9a   :  { %2512 = vmatpush1.bf16.msra.mxu0 %v3219_v3  ;;  %2635 = vmatpush1.bf16.msra.mxu1 %v3221_v5  ;;  %v3278_v3 = vcombine.high %v426_v60, %v430_v61  ;;  %v433_v5 = vld [vmem:[%s4674_s2 + $0xb40] sm:$0xff]  ;;  %v2937_v60 = vcombine.low %v84_v45, %v88_v47 }
  0x9b   :  { %2513 = vmatprep.subr.bf16.mxu0 %v3228_v6  ;;  %2636 = vmatprep.subr.bf16.mxu1 %v3230_v7  ;;  %v437_v6 = vld [vmem:[%s4674_s2 + $0xb60] sm:$0xff]  ;;  %v434_v7 = vld [vmem:[%s4674_s2 + $0xb48] sm:$0xff] }
  0x9c   :  { %v3284_v12 = vcombine.high %v433_v5, %v437_v6  ;;  %v3283_v20 = vcombine.low %v433_v5, %v437_v6  ;;  %v3285_v22 = vcombine.low %v434_v7, %v438_v8  ;;  %v104_v5 = vld [vmem:[%s4674_s2 + $0xf8] sm:$0xff] }
  0x9e   :  { %2514 = vmatpush1.bf16.msra.mxu0 %v3227_v13  ;;  %2637 = vmatpush1.bf16.msra.mxu1 %v3229_v15  ;;  %v3286_v13 = vcombine.high %v434_v7, %v438_v8  ;;  %v441_v15 = vld [vmem:[%s4674_s2 + $0xb80] sm:$0xff] }
  0x9f   :  { %2515 = vmatprep.subr.bf16.mxu0 %v3236_v16  ;;  %2638 = vmatprep.subr.bf16.mxu1 %v3238_v4  ;;  %v445_v16 = vld [vmem:[%s4674_s2 + $0xba0] sm:$0xff]  ;;  %v442_v4 = vld [vmem:[%s4674_s2 + $0xb88] sm:$0xff] }
  0xa0   :  { %v3292_v19 = vcombine.high %v441_v15, %v445_v16  ;;  %v3291_v30 = vcombine.low %v441_v15, %v445_v16  ;;  %v3293_v17 = vcombine.low %v442_v4, %v446_v18 }
  0xa2   :  { %2516 = vmatpush1.bf16.msra.mxu0 %v3235_v23  ;;  %2639 = vmatpush1.bf16.msra.mxu1 %v3237_v25  ;;  %v3294_v23 = vcombine.high %v442_v4, %v446_v18  ;;  %v449_v25 = vld [vmem:[%s4674_s2 + $0xbc0] sm:$0xff] }
  0xa3   :  { %2517 = vmatprep.subr.bf16.mxu0 %v3244_v27  ;;  %2640 = vmatprep.subr.bf16.mxu1 %v3246_v28  ;;  %v453_v27 = vld [vmem:[%s4674_s2 + $0xbe0] sm:$0xff]  ;;  %v450_v28 = vld [vmem:[%s4674_s2 + $0xbc8] sm:$0xff] }
  0xa4   :  { %v3300_v31 = vcombine.high %v449_v25, %v453_v27  ;;  %v3299_v38 = vcombine.low %v449_v25, %v453_v27  ;;  %v3301_v39 = vcombine.low %v450_v28, %v454_v29 }
  0xa6   :  { %2518 = vmatpush1.bf16.msra.mxu0 %v3243_v32  ;;  %2641 = vmatpush1.bf16.msra.mxu1 %v3245_v33  ;;  %v3302_v32 = vcombine.high %v450_v28, %v454_v29  ;;  %v75_v33 = vld [vmem:[%s4674_s2 + $0x10] sm:$0xff] }
  0xa7   :  { %2519 = vmatprep.subr.bf16.mxu0 %v3252_v34  ;;  %2642 = vmatprep.subr.bf16.mxu1 %v3254_v35  ;;  %v79_v34 = vld [vmem:[%s4674_s2 + $0x30] sm:$0xff]  ;;  %v76_v35 = vld [vmem:[%s4674_s2 + $0x18] sm:$0xff] }
  0xa8   :  { %v2928_v40 = vcombine.high %v75_v33, %v79_v34  ;;  %v2927_v48 = vcombine.low %v75_v33, %v79_v34  ;;  %v2929_v49 = vcombine.low %v76_v35, %v80_v37 }
  0xaa   :  { %2520 = vmatpush1.bf16.msra.mxu0 %v3251_v41  ;;  %2643 = vmatpush1.bf16.msra.mxu1 %v3253_v42  ;;  %v2930_v41 = vcombine.high %v76_v35, %v80_v37  ;;  %v83_v42 = vld [vmem:[%s4674_s2 + $0x50] sm:$0xff] }
  0xab   :  { %2521 = vmatprep.subr.bf16.mxu0 %v3260_v43  ;;  %2644 = vmatprep.subr.bf16.mxu1 %v3262_v44  ;;  %v87_v43 = vld [vmem:[%s4674_s2 + $0x70] sm:$0xff]  ;;  %v4059_v44 = vpack.c.bf16 %v3707_v21, %v3707_v21 }
  0xac   :  { %v91_v21 = vld [vmem:[%s4674_s2 + $0x90] sm:$0xff]  ;;  %v2935_v57 = vcombine.low %v83_v42, %v87_v43 }
  0xae   :  { %2522 = vmatpush1.bf16.msra.mxu0 %v3259_v50  ;;  %2645 = vmatpush1.bf16.msra.mxu1 %v3261_v51  ;;  %v2936_v50 = vcombine.high %v83_v42, %v87_v43  ;;  %v2938_v51 = vcombine.high %v84_v45, %v88_v47 }
  0xaf   :  { %2523 = vmatprep.subr.bf16.mxu0 %v3268_v52  ;;  %2646 = vmatprep.subr.bf16.mxu1 %v3270_v54  ;;  %v95_v52 = vld [vmem:[%s4674_s2 + $0xb0] sm:$0xff]  ;;  %v92_v54 = vld [vmem:[%s4674_s2 + $0x98] sm:$0xff] }
  0xb0   :  { %v2944_v61 = vcombine.high %v91_v21, %v95_v52  ;;  %v2943_v6 = vcombine.low %v91_v21, %v95_v52  ;;  %v2945_v7 = vcombine.low %v92_v54, %v96_v56 }
  0xb2   :  { %2524 = vmatpush1.bf16.msra.mxu0 %v3267_v62  ;;  %2647 = vmatpush1.bf16.msra.mxu1 %v3269_v63  ;;  %v2946_v62 = vcombine.high %v92_v54, %v96_v56  ;;  %v99_v63 = vld [vmem:[%s4674_s2 + $0xd0] sm:$0xff] }
  0xb3   :  { %2525 = vmatprep.subr.bf16.mxu0 %v3276_v2  ;;  %2648 = vmatprep.subr.bf16.mxu1 %v3278_v3  ;;  %v103_v2 = vld [vmem:[%s4674_s2 + $0xf0] sm:$0xff]  ;;  %v100_v3 = vld [vmem:[%s4674_s2 + $0xd8] sm:$0xff] }
  0xb4   :  { %v2952_v8 = vcombine.high %v99_v63, %v103_v2  ;;  %v2951_v15 = vcombine.low %v99_v63, %v103_v2  ;;  %v2953_v16 = vcombine.low %v100_v3, %v104_v5 }
  0xb6   :  { %2526 = vmatpush1.bf16.msra.mxu0 %v3275_v9  ;;  %2649 = vmatpush1.bf16.msra.mxu1 %v3277_v11  ;;  %v2954_v9 = vcombine.high %v100_v3, %v104_v5  ;;  %v107_v11 = vld [vmem:[%s4674_s2 + $0x110] sm:$0xff] }
  0xb7   :  { %2527 = vmatprep.subr.bf16.mxu0 %v3284_v12  ;;  %2650 = vmatprep.subr.bf16.mxu1 %v3286_v13  ;;  %v111_v12 = vld [vmem:[%s4674_s2 + $0x130] sm:$0xff]  ;;  %v112_v13 = vld [vmem:[%s4674_s2 + $0x138] sm:$0xff] }
  0xb8   :  { %v2960_v4 = vcombine.high %v107_v11, %v111_v12  ;;  %v2959_v25 = vcombine.low %v107_v11, %v111_v12 }
  0xba   :  { %2528 = vmatpush1.bf16.msra.mxu0 %v3283_v20  ;;  %2651 = vmatpush1.bf16.msra.mxu1 %v3285_v22  ;;  %v115_v20 = vld [vmem:[%s4674_s2 + $0x150] sm:$0xff] }
  0xbb   :  { %2529 = vmatprep.subr.bf16.mxu0 %v3292_v19  ;;  %2652 = vmatprep.subr.bf16.mxu1 %v3294_v23  ;;  %v119_v22 = vld [vmem:[%s4674_s2 + $0x170] sm:$0xff]  ;;  %v116_v19 = vld [vmem:[%s4674_s2 + $0x158] sm:$0xff] }
  0xbc   :  { %v120_v23 = vld [vmem:[%s4674_s2 + $0x178] sm:$0xff]  ;;  %v2968_v28 = vcombine.high %v115_v20, %v119_v22  ;;  %v2967_v33 = vcombine.low %v115_v20, %v119_v22 }
  0xbd   :  { %v2970_v29 = vcombine.high %v116_v19, %v120_v23  ;;  %v2969_v34 = vcombine.low %v116_v19, %v120_v23 }
  0xbe   :  { %2530 = vmatpush1.bf16.msra.mxu0 %v3291_v30  ;;  %2653 = vmatpush1.bf16.msra.mxu1 %v3293_v17  ;;  %v123_v30 = vld [vmem:[%s4674_s2 + $0x190] sm:$0xff] }
  0xbf   :  { %2531 = vmatprep.subr.bf16.mxu0 %v3300_v31  ;;  %2654 = vmatprep.subr.bf16.mxu1 %v3302_v32  ;;  %v127_v17 = vld [vmem:[%s4674_s2 + $0x1b0] sm:$0xff]  ;;  %v124_v31 = vld [vmem:[%s4674_s2 + $0x198] sm:$0xff] }
  0xc0   :  { %v128_v32 = vld [vmem:[%s4674_s2 + $0x1b8] sm:$0xff]  ;;  %v2976_v35 = vcombine.high %v123_v30, %v127_v17  ;;  %v2975_v42 = vcombine.low %v123_v30, %v127_v17 }
  0xc1   :  { %v2978_v37 = vcombine.high %v124_v31, %v128_v32  ;;  %v2977_v43 = vcombine.low %v124_v31, %v128_v32 }
  0xc2   :  { %2532 = vmatpush1.bf16.msra.mxu0 %v3299_v38  ;;  %2655 = vmatpush1.bf16.msra.mxu1 %v3301_v39  ;;  %v131_v38 = vld [vmem:[%s4674_s2 + $0x1d0] sm:$0xff] }
  0xc3   :  { %2665 = vmatprep.subr.bf16.mxu0 %v2928_v40  ;;  %2788 = vmatprep.subr.bf16.mxu1 %v2930_v41  ;;  %v135_v39 = vld [vmem:[%s4674_s2 + $0x1f0] sm:$0xff]  ;;  %v132_v40 = vld [vmem:[%s4674_s2 + $0x1d8] sm:$0xff] }
  0xc4   :  { %v136_v41 = vld [vmem:[%s4674_s2 + $0x1f8] sm:$0xff]  ;;  %v2984_v45 = vcombine.high %v131_v38, %v135_v39  ;;  %v2983_v21 = vcombine.low %v131_v38, %v135_v39 }
  0xc5   :  { %2534 = vmatmul.mubr.bf16.vlgmr.msra.gmra.mrb[0].mxu0 %v4059_v44  ;;  %2657 = vmatmul.mubr.bf16.vlgmr.msra.gmra.mrb[0].mxu1 %v4059_v44  ;;  %v2986_v47 = vcombine.high %v132_v40, %v136_v41  ;;  %v2985_v52 = vcombine.low %v132_v40, %v136_v41 }
  0xc6   :  { %2666 = vmatpush1.bf16.msra.mxu0 %v2927_v48  ;;  %2789 = vmatpush1.bf16.msra.mxu1 %v2929_v49  ;;  %v139_v48 = vld [vmem:[%s4674_s2 + $0x210] sm:$0xff] }
  0xc7   :  { %2667 = vmatprep.subr.bf16.mxu0 %v2936_v50  ;;  %2790 = vmatprep.subr.bf16.mxu1 %v2938_v51  ;;  %v143_v49 = vld [vmem:[%s4674_s2 + $0x230] sm:$0xff]  ;;  %v140_v50 = vld [vmem:[%s4674_s2 + $0x218] sm:$0xff] }
  0xc8   :  { %2697 = vmatprep.mubr.bf16.mxu0 %v3530_v26  ;;  %2820 = vmatprep.mubr.bf16.mxu1 %v3530_v26  ;;  %v108_v26 = vld [vmem:[%s4674_s2 + $0x118] sm:$0xff]  ;;  %v2992_v54 = vcombine.high %v139_v48, %v143_v49  ;;  %v2991_v63 = vcombine.low %v139_v48, %v143_v49 }
  0xc9   :  { %v2962_v18 = vcombine.high %v108_v26, %v112_v13  ;;  %v2961_v27 = vcombine.low %v108_v26, %v112_v13  ;;  %v144_v51 = vld [vmem:[%s4674_s2 + $0x238] sm:$0xff] }
  0xca   :  { %2668 = vmatpush1.bf16.msra.mxu0 %v2935_v57  ;;  %2791 = vmatpush1.bf16.msra.mxu1 %v2937_v60  ;;  %v2994_v56 = vcombine.high %v140_v50, %v144_v51  ;;  %v147_v57 = vld [vmem:[%s4674_s2 + $0x250] sm:$0xff]  ;;  %v2993_v2 = vcombine.low %v140_v50, %v144_v51 }
  0xcb   :  { %2669 = vmatprep.subr.bf16.mxu0 %v2944_v61  ;;  %2792 = vmatprep.subr.bf16.mxu1 %v2946_v62  ;;  %v151_v60 = vld [vmem:[%s4674_s2 + $0x270] sm:$0xff]  ;;  %v148_v61 = vld [vmem:[%s4674_s2 + $0x258] sm:$0xff] }
  0xcc   :  { %v152_v62 = vld [vmem:[%s4674_s2 + $0x278] sm:$0xff]  ;;  %v3000_v3 = vcombine.high %v147_v57, %v151_v60  ;;  %v2999_v11 = vcombine.low %v147_v57, %v151_v60 }
  0xcd   :  { %v3002_v5 = vcombine.high %v148_v61, %v152_v62  ;;  %v3001_v12 = vcombine.low %v148_v61, %v152_v62 }
  0xce   :  { %2670 = vmatpush1.bf16.msra.mxu0 %v2943_v6  ;;  %2793 = vmatpush1.bf16.msra.mxu1 %v2945_v7  ;;  %v155_v6 = vld [vmem:[%s4674_s2 + $0x290] sm:$0xff] }
  0xcf   :  { %2671 = vmatprep.subr.bf16.mxu0 %v2952_v8  ;;  %2794 = vmatprep.subr.bf16.mxu1 %v2954_v9  ;;  %v159_v7 = vld [vmem:[%s4674_s2 + $0x2b0] sm:$0xff]  ;;  %v156_v8 = vld [vmem:[%s4674_s2 + $0x298] sm:$0xff] }
  0xd0   :  { %v160_v9 = vld [vmem:[%s4674_s2 + $0x2b8] sm:$0xff]  ;;  %v3008_v26 = vcombine.high %v155_v6, %v159_v7  ;;  %v3007_v20 = vcombine.low %v155_v6, %v159_v7 }
  0xd1   :  { %v3010_v13 = vcombine.high %v156_v8, %v160_v9  ;;  %v3009_v22 = vcombine.low %v156_v8, %v160_v9 }
  0xd2   :  { %2672 = vmatpush1.bf16.msra.mxu0 %v2951_v15  ;;  %2795 = vmatpush1.bf16.msra.mxu1 %v2953_v16  ;;  %v163_v15 = vld [vmem:[%s4674_s2 + $0x2d0] sm:$0xff] }
  0xd3   :  { %2673 = vmatprep.subr.bf16.mxu0 %v2960_v4  ;;  %2796 = vmatprep.subr.bf16.mxu1 %v2962_v18  ;;  %v167_v16 = vld [vmem:[%s4674_s2 + $0x2f0] sm:$0xff]  ;;  %v164_v4 = vld [vmem:[%s4674_s2 + $0x2d8] sm:$0xff] }
  0xd4   :  { %v168_v18 = vld [vmem:[%s4674_s2 + $0x2f8] sm:$0xff]  ;;  %v3016_v19 = vcombine.high %v163_v15, %v167_v16  ;;  %v3015_v30 = vcombine.low %v163_v15, %v167_v16 }
  0xd5   :  { %v3018_v23 = vcombine.high %v164_v4, %v168_v18  ;;  %v3017_v17 = vcombine.low %v164_v4, %v168_v18 }
  0xd6   :  { %2674 = vmatpush1.bf16.msra.mxu0 %v2959_v25  ;;  %2797 = vmatpush1.bf16.msra.mxu1 %v2961_v27  ;;  %v171_v25 = vld [vmem:[%s4674_s2 + $0x310] sm:$0xff] }
  0xd7   :  { %2675 = vmatprep.subr.bf16.mxu0 %v2968_v28  ;;  %2798 = vmatprep.subr.bf16.mxu1 %v2970_v29  ;;  %v175_v27 = vld [vmem:[%s4674_s2 + $0x330] sm:$0xff]  ;;  %v172_v28 = vld [vmem:[%s4674_s2 + $0x318] sm:$0xff] }
  0xd8   :  { %v176_v29 = vld [vmem:[%s4674_s2 + $0x338] sm:$0xff]  ;;  %v3024_v31 = vcombine.high %v171_v25, %v175_v27  ;;  %v3023_v38 = vcombine.low %v171_v25, %v175_v27 }
  0xd9   :  { %v3026_v32 = vcombine.high %v172_v28, %v176_v29  ;;  %v3025_v39 = vcombine.low %v172_v28, %v176_v29 }
  0xda   :  { %2676 = vmatpush1.bf16.msra.mxu0 %v2967_v33  ;;  %2799 = vmatpush1.bf16.msra.mxu1 %v2969_v34  ;;  %v179_v33 = vld [vmem:[%s4674_s2 + $0x350] sm:$0xff] }
  0xdb   :  { %2677 = vmatprep.subr.bf16.mxu0 %v2976_v35  ;;  %2800 = vmatprep.subr.bf16.mxu1 %v2978_v37  ;;  %v183_v34 = vld [vmem:[%s4674_s2 + $0x370] sm:$0xff]  ;;  %v180_v35 = vld [vmem:[%s4674_s2 + $0x358] sm:$0xff] }
  0xdc   :  { %v184_v37 = vld [vmem:[%s4674_s2 + $0x378] sm:$0xff]  ;;  %v3032_v40 = vcombine.high %v179_v33, %v183_v34  ;;  %v3031_v48 = vcombine.low %v179_v33, %v183_v34 }
  0xdd   :  { %v3034_v41 = vcombine.high %v180_v35, %v184_v37  ;;  %v3033_v49 = vcombine.low %v180_v35, %v184_v37  ;;  %v235_v37 = vld [vmem:[%s4674_s2 + $0x510] sm:$0xff] }
  0xde   :  { %2678 = vmatpush1.bf16.msra.mxu0 %v2975_v42  ;;  %2801 = vmatpush1.bf16.msra.mxu1 %v2977_v43  ;;  %v187_v42 = vld [vmem:[%s4674_s2 + $0x390] sm:$0xff] }
  0xdf   :  { %2679 = vmatprep.subr.bf16.mxu0 %v2984_v45  ;;  %2802 = vmatprep.subr.bf16.mxu1 %v2986_v47  ;;  %v191_v43 = vld [vmem:[%s4674_s2 + $0x3b0] sm:$0xff]  ;;  %v188_v45 = vld [vmem:[%s4674_s2 + $0x398] sm:$0xff] }
  0xe0   :  { %v192_v47 = vld [vmem:[%s4674_s2 + $0x3b8] sm:$0xff]  ;;  %v3040_v50 = vcombine.high %v187_v42, %v191_v43  ;;  %v3039_v57 = vcombine.low %v187_v42, %v191_v43 }
  0xe1   :  { %v3042_v51 = vcombine.high %v188_v45, %v192_v47  ;;  %v3041_v60 = vcombine.low %v188_v45, %v192_v47  ;;  %v243_v45 = vld [vmem:[%s4674_s2 + $0x550] sm:$0xff] }
  0xe2   :  { %2680 = vmatpush1.bf16.msra.mxu0 %v2983_v21  ;;  %2803 = vmatpush1.bf16.msra.mxu1 %v2985_v52  ;;  %v195_v21 = vld [vmem:[%s4674_s2 + $0x3d0] sm:$0xff] }
  0xe3   :  { %2681 = vmatprep.subr.bf16.mxu0 %v2992_v54  ;;  %2804 = vmatprep.subr.bf16.mxu1 %v2994_v56  ;;  %v199_v52 = vld [vmem:[%s4674_s2 + $0x3f0] sm:$0xff]  ;;  %v196_v54 = vld [vmem:[%s4674_s2 + $0x3d8] sm:$0xff] }
  0xe4   :  { %v200_v56 = vld [vmem:[%s4674_s2 + $0x3f8] sm:$0xff]  ;;  %v3048_v61 = vcombine.high %v195_v21, %v199_v52  ;;  %v3047_v6 = vcombine.low %v195_v21, %v199_v52  ;;  %v247_v47 = vld [vmem:[%s4674_s2 + $0x570] sm:$0xff] }
  0xe5   :  { %v3050_v62 = vcombine.high %v196_v54, %v200_v56  ;;  %v3049_v7 = vcombine.low %v196_v54, %v200_v56  ;;  %v3096_v21 = vcombine.high %v243_v45, %v247_v47  ;;  %v251_v54 = vld [vmem:[%s4674_s2 + $0x590] sm:$0xff] }
  0xe6   :  { %2682 = vmatpush1.bf16.msra.mxu0 %v2991_v63  ;;  %2805 = vmatpush1.bf16.msra.mxu1 %v2993_v2  ;;  %v203_v63 = vld [vmem:[%s4674_s2 + $0x410] sm:$0xff] }
  0xe7   :  { %2683 = vmatprep.subr.bf16.mxu0 %v3000_v3  ;;  %2806 = vmatprep.subr.bf16.mxu1 %v3002_v5  ;;  %v207_v2 = vld [vmem:[%s4674_s2 + $0x430] sm:$0xff]  ;;  %v204_v3 = vld [vmem:[%s4674_s2 + $0x418] sm:$0xff] }
  0xe8   :  { %v208_v5 = vld [vmem:[%s4674_s2 + $0x438] sm:$0xff]  ;;  %v3056_v8 = vcombine.high %v203_v63, %v207_v2  ;;  %v3055_v15 = vcombine.low %v203_v63, %v207_v2  ;;  %v255_v56 = vld [vmem:[%s4674_s2 + $0x5b0] sm:$0xff] }
  0xe9   :  { %v3058_v9 = vcombine.high %v204_v3, %v208_v5  ;;  %v3057_v16 = vcombine.low %v204_v3, %v208_v5  ;;  %v3104_v63 = vcombine.high %v251_v54, %v255_v56  ;;  %v259_v3 = vld [vmem:[%s4674_s2 + $0x5d0] sm:$0xff] }
  0xea   :  { %2684 = vmatpush1.bf16.msra.mxu0 %v2999_v11  ;;  %2807 = vmatpush1.bf16.msra.mxu1 %v3001_v12  ;;  %v211_v11 = vld [vmem:[%s4674_s2 + $0x450] sm:$0xff] }
  0xeb   :  { %2685 = vmatprep.subr.bf16.mxu0 %v3008_v26  ;;  %2808 = vmatprep.subr.bf16.mxu1 %v3010_v13  ;;  %v215_v12 = vld [vmem:[%s4674_s2 + $0x470] sm:$0xff]  ;;  %v212_v26 = vld [vmem:[%s4674_s2 + $0x458] sm:$0xff] }
  0xec   :  { %v216_v13 = vld [vmem:[%s4674_s2 + $0x478] sm:$0xff]  ;;  %v3064_v4 = vcombine.high %v211_v11, %v215_v12  ;;  %v3063_v25 = vcombine.low %v211_v11, %v215_v12  ;;  %v263_v5 = vld [vmem:[%s4674_s2 + $0x5f0] sm:$0xff] }
  0xed   :  { %v3066_v18 = vcombine.high %v212_v26, %v216_v13  ;;  %v3065_v27 = vcombine.low %v212_v26, %v216_v13  ;;  %v3112_v11 = vcombine.high %v259_v3, %v263_v5  ;;  %v267_v26 = vld [vmem:[%s4674_s2 + $0x610] sm:$0xff] }
  0xee   :  { %2686 = vmatpush1.bf16.msra.mxu0 %v3007_v20  ;;  %2809 = vmatpush1.bf16.msra.mxu1 %v3009_v22  ;;  %v219_v20 = vld [vmem:[%s4674_s2 + $0x490] sm:$0xff] }
  0xef   :  { %2687 = vmatprep.subr.bf16.mxu0 %v3016_v19  ;;  %2810 = vmatprep.subr.bf16.mxu1 %v3018_v23  ;;  %v223_v22 = vld [vmem:[%s4674_s2 + $0x4b0] sm:$0xff]  ;;  %v220_v19 = vld [vmem:[%s4674_s2 + $0x498] sm:$0xff] }
  0xf0   :  { %v224_v23 = vld [vmem:[%s4674_s2 + $0x4b8] sm:$0xff]  ;;  %v3072_v28 = vcombine.high %v219_v20, %v223_v22  ;;  %v271_v13 = vld [vmem:[%s4674_s2 + $0x630] sm:$0xff] }
  0xf1   :  { %v3074_v29 = vcombine.high %v220_v19, %v224_v23  ;;  %v3073_v33 = vcombine.low %v220_v19, %v224_v23  ;;  %v275_v19 = vld [vmem:[%s4674_s2 + $0x650] sm:$0xff] }
  0xf2   :  { %2688 = vmatpush1.bf16.msra.mxu0 %v3015_v30  ;;  %2811 = vmatpush1.bf16.msra.mxu1 %v3017_v17  ;;  %v227_v30 = vld [vmem:[%s4674_s2 + $0x4d0] sm:$0xff] }
  0xf3   :  { %2689 = vmatprep.subr.bf16.mxu0 %v3024_v31  ;;  %2812 = vmatprep.subr.bf16.mxu1 %v3026_v32  ;;  %v231_v17 = vld [vmem:[%s4674_s2 + $0x4f0] sm:$0xff]  ;;  %v232_v31 = vld [vmem:[%s4674_s2 + $0x4f8] sm:$0xff]  ;;  %v3071_v32 = vcombine.low %v219_v20, %v223_v22  ;;  %v3120_v20 = vcombine.high %v267_v26, %v271_v13 }
  0xf4   :  { %v3080_v34 = vcombine.high %v227_v30, %v231_v17  ;;  %v279_v23 = vld [vmem:[%s4674_s2 + $0x670] sm:$0xff] }
  0xf6   :  { %2690 = vmatpush1.bf16.msra.mxu0 %v3023_v38  ;;  %2813 = vmatpush1.bf16.msra.mxu1 %v3025_v39  ;;  %v239_v38 = vld [vmem:[%s4674_s2 + $0x530] sm:$0xff]  ;;  %v240_v39 = vld [vmem:[%s4674_s2 + $0x538] sm:$0xff] }
  0xf7   :  { %2691 = vmatprep.subr.bf16.mxu0 %v3032_v40  ;;  %2814 = vmatprep.subr.bf16.mxu1 %v3034_v41  ;;  %v3079_v40 = vcombine.low %v227_v30, %v231_v17  ;;  %v3088_v42 = vcombine.high %v235_v37, %v239_v38  ;;  %v3128_v30 = vcombine.high %v275_v19, %v279_v23 }
  0xfa   :  { %2692 = vmatpush1.bf16.msra.mxu0 %v3031_v48  ;;  %2815 = vmatpush1.bf16.msra.mxu1 %v3033_v49  ;;  %v244_v48 = vld [vmem:[%s4674_s2 + $0x558] sm:$0xff] }
  0xfb   :  { %2693 = vmatprep.subr.bf16.mxu0 %v3040_v50  ;;  %2816 = vmatprep.subr.bf16.mxu1 %v3042_v51  ;;  %v248_v49 = vld [vmem:[%s4674_s2 + $0x578] sm:$0xff]  ;;  %v3087_v50 = vcombine.low %v235_v37, %v239_v38 }
  0xfc   :  { %v3098_v52 = vcombine.high %v244_v48, %v248_v49 }
  0xfe   :  { %2694 = vmatpush1.bf16.msra.mxu0 %v3039_v57  ;;  %2817 = vmatpush1.bf16.msra.mxu1 %v3041_v60  ;;  %v252_v57 = vld [vmem:[%s4674_s2 + $0x598] sm:$0xff] }
  0xff   :  { %2695 = vmatprep.subr.bf16.mxu0 %v3048_v61  ;;  %2818 = vmatprep.subr.bf16.mxu1 %v3050_v62  ;;  %v256_v60 = vld [vmem:[%s4674_s2 + $0x5b8] sm:$0xff]  ;;  %v3095_v61 = vcombine.low %v243_v45, %v247_v47  ;;  %v3097_v62 = vcombine.low %v244_v48, %v248_v49  ;;  %v299_v48 = vld [vmem:[%s4674_s2 + $0x710] sm:$0xff] }
 0x100   :  { %v3106_v2 = vcombine.high %v252_v57, %v256_v60  ;;  %v303_v49 = vld [vmem:[%s4674_s2 + $0x730] sm:$0xff] }
 0x102   :  { %2696 = vmatpush1.bf16.msra.mxu0 %v3047_v6  ;;  %2819 = vmatpush1.bf16.msra.mxu1 %v3049_v7  ;;  %v260_v6 = vld [vmem:[%s4674_s2 + $0x5d8] sm:$0xff] }
 0x103   :  { %2706 = vmatprep.subr.bf16.mxu0 %v3056_v8  ;;  %2829 = vmatprep.subr.bf16.mxu1 %v3058_v9  ;;  %v264_v7 = vld [vmem:[%s4674_s2 + $0x5f8] sm:$0xff]  ;;  %v3103_v8 = vcombine.low %v251_v54, %v255_v56  ;;  %v3105_v9 = vcombine.low %v252_v57, %v256_v60  ;;  %v3152_v54 = vcombine.high %v299_v48, %v303_v49  ;;  %v307_v57 = vld [vmem:[%s4674_s2 + $0x750] sm:$0xff] }
 0x104   :  { %v3114_v12 = vcombine.high %v260_v6, %v264_v7  ;;  %v311_v60 = vld [vmem:[%s4674_s2 + $0x770] sm:$0xff] }
 0x105   :  { %2698 = vmatmul.mubr.bf16.vlgmr.msra.gmra.mrb[4].mxu0 %v3635_v36  ;;  %2821 = vmatmul.mubr.bf16.vlgmr.msra.gmra.mrb[4].mxu1 %v3635_v36  ;;  %v228_v36 = vld [vmem:[%s4674_s2 + $0x4d8] sm:$0xff] }
 0x106   :  { %2707 = vmatpush1.bf16.msra.mxu0 %v3055_v15  ;;  %2830 = vmatpush1.bf16.msra.mxu1 %v3057_v16  ;;  %v3082_v35 = vcombine.high %v228_v36, %v232_v31  ;;  %v3081_v41 = vcombine.low %v228_v36, %v232_v31  ;;  %v268_v15 = vld [vmem:[%s4674_s2 + $0x618] sm:$0xff]  ;;  %v283_v36 = vld [vmem:[%s4674_s2 + $0x690] sm:$0xff] }
 0x107   :  { %2708 = vmatprep.subr.bf16.mxu0 %v3064_v4  ;;  %2831 = vmatprep.subr.bf16.mxu1 %v3066_v18  ;;  %v272_v16 = vld [vmem:[%s4674_s2 + $0x638] sm:$0xff]  ;;  %v3111_v4 = vcombine.low %v259_v3, %v263_v5  ;;  %v3113_v18 = vcombine.low %v260_v6, %v264_v7  ;;  %v287_v31 = vld [vmem:[%s4674_s2 + $0x6b0] sm:$0xff]  ;;  %v3160_v3 = vcombine.high %v307_v57, %v311_v60 }
 0x108   :  { %2738 = vmatprep.mubr.bf16.mxu0 %v3652_v46  ;;  %2861 = vmatprep.mubr.bf16.mxu1 %v3652_v46  ;;  %v236_v46 = vld [vmem:[%s4674_s2 + $0x518] sm:$0xff]  ;;  %v3122_v22 = vcombine.high %v268_v15, %v272_v16  ;;  %v3136_v37 = vcombine.high %v283_v36, %v287_v31  ;;  %v315_v6 = vld [vmem:[%s4674_s2 + $0x790] sm:$0xff] }
 0x109   :  { %v3090_v43 = vcombine.high %v236_v46, %v240_v39  ;;  %v3089_v51 = vcombine.low %v236_v46, %v240_v39  ;;  %v291_v46 = vld [vmem:[%s4674_s2 + $0x6d0] sm:$0xff] }
 0x10a   :  { %2709 = vmatpush1.bf16.msra.mxu0 %v3063_v25  ;;  %2832 = vmatpush1.bf16.msra.mxu1 %v3065_v27  ;;  %v276_v25 = vld [vmem:[%s4674_s2 + $0x658] sm:$0xff]  ;;  %v295_v39 = vld [vmem:[%s4674_s2 + $0x6f0] sm:$0xff] }
 0x10b   :  { %2710 = vmatprep.subr.bf16.mxu0 %v3072_v28  ;;  %2833 = vmatprep.subr.bf16.mxu1 %v3074_v29  ;;  %v280_v27 = vld [vmem:[%s4674_s2 + $0x678] sm:$0xff]  ;;  %v3119_v28 = vcombine.low %v267_v26, %v271_v13  ;;  %v3121_v29 = vcombine.low %v268_v15, %v272_v16  ;;  %v3144_v45 = vcombine.high %v291_v46, %v295_v39  ;;  %v319_v7 = vld [vmem:[%s4674_s2 + $0x7b0] sm:$0xff] }
 0x10c   :  { %v3130_v17 = vcombine.high %v276_v25, %v280_v27  ;;  %v3168_v26 = vcombine.high %v315_v6, %v319_v7  ;;  %v323_v15 = vld [vmem:[%s4674_s2 + $0x7d0] sm:$0xff] }
 0x10d   :  { %v327_v16 = vld [vmem:[%s4674_s2 + $0x7f0] sm:$0xff] }
 0x10e   :  { %2711 = vmatpush1.bf16.msra.mxu0 %v3071_v32  ;;  %2834 = vmatpush1.bf16.msra.mxu1 %v3073_v33  ;;  %v284_v32 = vld [vmem:[%s4674_s2 + $0x698] sm:$0xff] }
 0x10f   :  { %2712 = vmatprep.subr.bf16.mxu0 %v3080_v34  ;;  %2835 = vmatprep.subr.bf16.mxu1 %v3082_v35  ;;  %v288_v33 = vld [vmem:[%s4674_s2 + $0x6b8] sm:$0xff]  ;;  %v3127_v34 = vcombine.low %v275_v19, %v279_v23  ;;  %v3129_v35 = vcombine.low %v276_v25, %v280_v27  ;;  %v3176_v19 = vcombine.high %v323_v15, %v327_v16  ;;  %v331_v25 = vld [vmem:[%s4674_s2 + $0x810] sm:$0xff] }
 0x110   :  { %v3138_v38 = vcombine.high %v284_v32, %v288_v33  ;;  %v335_v27 = vld [vmem:[%s4674_s2 + $0x830] sm:$0xff] }
 0x112   :  { %2713 = vmatpush1.bf16.msra.mxu0 %v3079_v40  ;;  %2836 = vmatpush1.bf16.msra.mxu1 %v3081_v41  ;;  %v292_v40 = vld [vmem:[%s4674_s2 + $0x6d8] sm:$0xff] }
 0x113   :  { %2714 = vmatprep.subr.bf16.mxu0 %v3088_v42  ;;  %2837 = vmatprep.subr.bf16.mxu1 %v3090_v43  ;;  %v296_v41 = vld [vmem:[%s4674_s2 + $0x6f8] sm:$0xff]  ;;  %v3135_v42 = vcombine.low %v283_v36, %v287_v31  ;;  %v3137_v43 = vcombine.low %v284_v32, %v288_v33  ;;  %v3184_v36 = vcombine.high %v331_v25, %v335_v27  ;;  %v339_v32 = vld [vmem:[%s4674_s2 + $0x850] sm:$0xff] }
 0x114   :  { %v3146_v47 = vcombine.high %v292_v40, %v296_v41  ;;  %v343_v33 = vld [vmem:[%s4674_s2 + $0x870] sm:$0xff] }
 0x116   :  { %2715 = vmatpush1.bf16.msra.mxu0 %v3087_v50  ;;  %2838 = vmatpush1.bf16.msra.mxu1 %v3089_v51  ;;  %v300_v50 = vld [vmem:[%s4674_s2 + $0x718] sm:$0xff] }
 0x117   :  { %2716 = vmatprep.subr.bf16.mxu0 %v3096_v21  ;;  %2839 = vmatprep.subr.bf16.mxu1 %v3098_v52  ;;  %v304_v51 = vld [vmem:[%s4674_s2 + $0x738] sm:$0xff]  ;;  %v3143_v21 = vcombine.low %v291_v46, %v295_v39  ;;  %v3145_v52 = vcombine.low %v292_v40, %v296_v41  ;;  %v3192_v46 = vcombine.high %v339_v32, %v343_v33  ;;  %v347_v40 = vld [vmem:[%s4674_s2 + $0x890] sm:$0xff] }
 0x118   :  { %v3154_v56 = vcombine.high %v300_v50, %v304_v51  ;;  %v351_v41 = vld [vmem:[%s4674_s2 + $0x8b0] sm:$0xff] }
 0x11a   :  { %2717 = vmatpush1.bf16.msra.mxu0 %v3095_v61  ;;  %2840 = vmatpush1.bf16.msra.mxu1 %v3097_v62  ;;  %v308_v61 = vld [vmem:[%s4674_s2 + $0x758] sm:$0xff] }
 0x11b   :  { %2718 = vmatprep.subr.bf16.mxu0 %v3104_v63  ;;  %2841 = vmatprep.subr.bf16.mxu1 %v3106_v2  ;;  %v312_v62 = vld [vmem:[%s4674_s2 + $0x778] sm:$0xff]  ;;  %v3151_v63 = vcombine.low %v299_v48, %v303_v49  ;;  %v3153_v2 = vcombine.low %v300_v50, %v304_v51  ;;  %v3200_v48 = vcombine.high %v347_v40, %v351_v41  ;;  %v355_v50 = vld [vmem:[%s4674_s2 + $0x8d0] sm:$0xff] }
 0x11c   :  { %v3162_v5 = vcombine.high %v308_v61, %v312_v62  ;;  %v359_v51 = vld [vmem:[%s4674_s2 + $0x8f0] sm:$0xff] }
 0x11e   :  { %2719 = vmatpush1.bf16.msra.mxu0 %v3103_v8  ;;  %2842 = vmatpush1.bf16.msra.mxu1 %v3105_v9  ;;  %v316_v8 = vld [vmem:[%s4674_s2 + $0x798] sm:$0xff] }
 0x11f   :  { %2720 = vmatprep.subr.bf16.mxu0 %v3112_v11  ;;  %2843 = vmatprep.subr.bf16.mxu1 %v3114_v12  ;;  %v320_v9 = vld [vmem:[%s4674_s2 + $0x7b8] sm:$0xff]  ;;  %v3159_v11 = vcombine.low %v307_v57, %v311_v60  ;;  %v3161_v12 = vcombine.low %v308_v61, %v312_v62  ;;  %v363_v60 = vld [vmem:[%s4674_s2 + $0x910] sm:$0xff] }
 0x120   :  { %v3170_v13 = vcombine.high %v316_v8, %v320_v9  ;;  %v367_v61 = vld [vmem:[%s4674_s2 + $0x930] sm:$0xff]  ;;  %v368_v62 = vld [vmem:[%s4674_s2 + $0x938] sm:$0xff] }
 0x122   :  { %2721 = vmatpush1.bf16.msra.mxu0 %v3111_v4  ;;  %2844 = vmatpush1.bf16.msra.mxu1 %v3113_v18  ;;  %v324_v4 = vld [vmem:[%s4674_s2 + $0x7d8] sm:$0xff] }
 0x123   :  { %2722 = vmatprep.subr.bf16.mxu0 %v3120_v20  ;;  %2845 = vmatprep.subr.bf16.mxu1 %v3122_v22  ;;  %v328_v18 = vld [vmem:[%s4674_s2 + $0x7f8] sm:$0xff]  ;;  %v3167_v20 = vcombine.low %v315_v6, %v319_v7  ;;  %v3169_v22 = vcombine.low %v316_v8, %v320_v9  ;;  %v371_v6 = vld [vmem:[%s4674_s2 + $0x950] sm:$0xff] }
 0x124   :  { %v3178_v23 = vcombine.high %v324_v4, %v328_v18  ;;  %v375_v7 = vld [vmem:[%s4674_s2 + $0x970] sm:$0xff]  ;;  %v372_v8 = vld [vmem:[%s4674_s2 + $0x958] sm:$0xff] }
 0x125   :  { %v376_v9 = vld [vmem:[%s4674_s2 + $0x978] sm:$0xff] }
 0x126   :  { %2723 = vmatpush1.bf16.msra.mxu0 %v3119_v28  ;;  %2846 = vmatpush1.bf16.msra.mxu1 %v3121_v29  ;;  %v332_v28 = vld [vmem:[%s4674_s2 + $0x818] sm:$0xff] }
 0x127   :  { %2724 = vmatprep.subr.bf16.mxu0 %v3128_v30  ;;  %2847 = vmatprep.subr.bf16.mxu1 %v3130_v17  ;;  %v336_v29 = vld [vmem:[%s4674_s2 + $0x838] sm:$0xff]  ;;  %v3175_v30 = vcombine.low %v323_v15, %v327_v16  ;;  %v3177_v17 = vcombine.low %v324_v4, %v328_v18  ;;  %v379_v15 = vld [vmem:[%s4674_s2 + $0x990] sm:$0xff] }
 0x128   :  { %v3186_v31 = vcombine.high %v332_v28, %v336_v29  ;;  %v383_v16 = vld [vmem:[%s4674_s2 + $0x9b0] sm:$0xff]  ;;  %v380_v4 = vld [vmem:[%s4674_s2 + $0x998] sm:$0xff] }
 0x129   :  { %v384_v18 = vld [vmem:[%s4674_s2 + $0x9b8] sm:$0xff] }
 0x12a   :  { %2725 = vmatpush1.bf16.msra.mxu0 %v3127_v34  ;;  %2848 = vmatpush1.bf16.msra.mxu1 %v3129_v35  ;;  %v340_v34 = vld [vmem:[%s4674_s2 + $0x858] sm:$0xff] }
 0x12b   :  { %2726 = vmatprep.subr.bf16.mxu0 %v3136_v37  ;;  %2849 = vmatprep.subr.bf16.mxu1 %v3138_v38  ;;  %v344_v35 = vld [vmem:[%s4674_s2 + $0x878] sm:$0xff]  ;;  %v3183_v37 = vcombine.low %v331_v25, %v335_v27  ;;  %v3185_v38 = vcombine.low %v332_v28, %v336_v29  ;;  %v387_v25 = vld [vmem:[%s4674_s2 + $0x9d0] sm:$0xff] }
 0x12c   :  { %v3194_v39 = vcombine.high %v340_v34, %v344_v35  ;;  %v391_v27 = vld [vmem:[%s4674_s2 + $0x9f0] sm:$0xff]  ;;  %v388_v28 = vld [vmem:[%s4674_s2 + $0x9d8] sm:$0xff] }
 0x12d   :  { %v392_v29 = vld [vmem:[%s4674_s2 + $0x9f8] sm:$0xff] }
 0x12e   :  { %2727 = vmatpush1.bf16.msra.mxu0 %v3135_v42  ;;  %2850 = vmatpush1.bf16.msra.mxu1 %v3137_v43  ;;  %v348_v42 = vld [vmem:[%s4674_s2 + $0x898] sm:$0xff] }
 0x12f   :  { %2728 = vmatprep.subr.bf16.mxu0 %v3144_v45  ;;  %2851 = vmatprep.subr.bf16.mxu1 %v3146_v47  ;;  %v352_v43 = vld [vmem:[%s4674_s2 + $0x8b8] sm:$0xff]  ;;  %v3191_v45 = vcombine.low %v339_v32, %v343_v33  ;;  %v3193_v47 = vcombine.low %v340_v34, %v344_v35  ;;  %v395_v32 = vld [vmem:[%s4674_s2 + $0xa10] sm:$0xff] }
 0x130   :  { %v3202_v49 = vcombine.high %v348_v42, %v352_v43  ;;  %v399_v33 = vld [vmem:[%s4674_s2 + $0xa30] sm:$0xff]  ;;  %v396_v34 = vld [vmem:[%s4674_s2 + $0xa18] sm:$0xff] }
 0x131   :  { %v400_v35 = vld [vmem:[%s4674_s2 + $0xa38] sm:$0xff] }
 0x132   :  { %2729 = vmatpush1.bf16.msra.mxu0 %v3143_v21  ;;  %2852 = vmatpush1.bf16.msra.mxu1 %v3145_v52  ;;  %v360_v21 = vld [vmem:[%s4674_s2 + $0x8f8] sm:$0xff]  ;;  %v3199_v52 = vcombine.low %v347_v40, %v351_v41  ;;  %v403_v40 = vld [vmem:[%s4674_s2 + $0xa50] sm:$0xff] }
 0x133   :  { %2730 = vmatprep.subr.bf16.mxu0 %v3152_v54  ;;  %2853 = vmatprep.subr.bf16.mxu1 %v3154_v56  ;;  %v3201_v54 = vcombine.low %v348_v42, %v352_v43  ;;  %v3208_v56 = vcombine.high %v355_v50, %v359_v51  ;;  %v407_v41 = vld [vmem:[%s4674_s2 + $0xa70] sm:$0xff]  ;;  %v404_v42 = vld [vmem:[%s4674_s2 + $0xa58] sm:$0xff] }
 0x134   :  { %v408_v43 = vld [vmem:[%s4674_s2 + $0xa78] sm:$0xff] }
 0x136   :  { %2731 = vmatpush1.bf16.msra.mxu0 %v3151_v63  ;;  %2854 = vmatpush1.bf16.msra.mxu1 %v3153_v2  ;;  %v3207_v63 = vcombine.low %v355_v50, %v359_v51  ;;  %v411_v50 = vld [vmem:[%s4674_s2 + $0xa90] sm:$0xff] }
 0x137   :  { %2732 = vmatprep.subr.bf16.mxu0 %v3160_v3  ;;  %2855 = vmatprep.subr.bf16.mxu1 %v3162_v5  ;;  %v3216_v3 = vcombine.high %v363_v60, %v367_v61  ;;  %v415_v51 = vld [vmem:[%s4674_s2 + $0xab0] sm:$0xff] }
 0x13a   :  { %2733 = vmatpush1.bf16.msra.mxu0 %v3159_v11  ;;  %2856 = vmatpush1.bf16.msra.mxu1 %v3161_v12  ;;  %v3215_v11 = vcombine.low %v363_v60, %v367_v61  ;;  %v419_v60 = vld [vmem:[%s4674_s2 + $0xad0] sm:$0xff] }
 0x13b   :  { %2734 = vmatprep.subr.bf16.mxu0 %v3168_v26  ;;  %2857 = vmatprep.subr.bf16.mxu1 %v3170_v13  ;;  %v3224_v26 = vcombine.high %v371_v6, %v375_v7  ;;  %v3226_v13 = vcombine.high %v372_v8, %v376_v9  ;;  %v423_v61 = vld [vmem:[%s4674_s2 + $0xaf0] sm:$0xff] }
 0x13e   :  { %2735 = vmatpush1.bf16.msra.mxu0 %v3167_v20  ;;  %2858 = vmatpush1.bf16.msra.mxu1 %v3169_v22  ;;  %v3223_v20 = vcombine.low %v371_v6, %v375_v7  ;;  %v3225_v22 = vcombine.low %v372_v8, %v376_v9  ;;  %v427_v6 = vld [vmem:[%s4674_s2 + $0xb10] sm:$0xff]  ;;  %v428_v8 = vld [vmem:[%s4674_s2 + $0xb18] sm:$0xff] }
 0x13f   :  { %2736 = vmatprep.subr.bf16.mxu0 %v3176_v19  ;;  %2859 = vmatprep.subr.bf16.mxu1 %v3178_v23  ;;  %v3232_v19 = vcombine.high %v379_v15, %v383_v16  ;;  %v3234_v23 = vcombine.high %v380_v4, %v384_v18  ;;  %v431_v7 = vld [vmem:[%s4674_s2 + $0xb30] sm:$0xff]  ;;  %v432_v9 = vld [vmem:[%s4674_s2 + $0xb38] sm:$0xff] }
 0x142   :  { %2737 = vmatpush1.bf16.msra.mxu0 %v3175_v30  ;;  %2860 = vmatpush1.bf16.msra.mxu1 %v3177_v17  ;;  %v3231_v30 = vcombine.low %v379_v15, %v383_v16  ;;  %v3233_v17 = vcombine.low %v380_v4, %v384_v18  ;;  %v435_v15 = vld [vmem:[%s4674_s2 + $0xb50] sm:$0xff]  ;;  %v436_v4 = vld [vmem:[%s4674_s2 + $0xb58] sm:$0xff] }
 0x143   :  { %2747 = vmatprep.subr.bf16.mxu0 %v3184_v36  ;;  %2870 = vmatprep.subr.bf16.mxu1 %v3186_v31  ;;  %v3240_v36 = vcombine.high %v387_v25, %v391_v27  ;;  %v3242_v31 = vcombine.high %v388_v28, %v392_v29  ;;  %v439_v16 = vld [vmem:[%s4674_s2 + $0xb70] sm:$0xff]  ;;  %v440_v18 = vld [vmem:[%s4674_s2 + $0xb78] sm:$0xff] }
 0x145   :  { %2739 = vmatmul.mubr.bf16.vlgmr.msra.gmra.mrb[4].mxu0 %v3855_v14  ;;  %2862 = vmatmul.mubr.bf16.vlgmr.msra.gmra.mrb[4].mxu1 %v3855_v14  ;;  %v356_v14 = vld [vmem:[%s4674_s2 + $0x8d8] sm:$0xff] }
 0x146   :  { %2748 = vmatpush1.bf16.msra.mxu0 %v3183_v37  ;;  %2871 = vmatpush1.bf16.msra.mxu1 %v3185_v38  ;;  %v3210_v57 = vcombine.high %v356_v14, %v360_v21  ;;  %v3209_v2 = vcombine.low %v356_v14, %v360_v21  ;;  %v3239_v37 = vcombine.low %v387_v25, %v391_v27  ;;  %v412_v14 = vld [vmem:[%s4674_s2 + $0xa98] sm:$0xff]  ;;  %v443_v25 = vld [vmem:[%s4674_s2 + $0xb90] sm:$0xff] }
 0x147   :  { %2749 = vmatprep.subr.bf16.mxu0 %v3192_v46  ;;  %2872 = vmatprep.subr.bf16.mxu1 %v3194_v39  ;;  %v3241_v38 = vcombine.low %v388_v28, %v392_v29  ;;  %v3248_v46 = vcombine.high %v395_v32, %v399_v33  ;;  %v3250_v39 = vcombine.high %v396_v34, %v400_v35  ;;  %v416_v21 = vld [vmem:[%s4674_s2 + $0xab8] sm:$0xff]  ;;  %v447_v27 = vld [vmem:[%s4674_s2 + $0xbb0] sm:$0xff] }
 0x148   :  { %2779 = vmatprep.mubr.bf16.mxu0 %v3871_v24  ;;  %2902 = vmatprep.mubr.bf16.mxu1 %v3871_v24  ;;  %v364_v24 = vld [vmem:[%s4674_s2 + $0x918] sm:$0xff] }
 0x149   :  { %v3218_v5 = vcombine.high %v364_v24, %v368_v62  ;;  %v3217_v12 = vcombine.low %v364_v24, %v368_v62  ;;  %v420_v24 = vld [vmem:[%s4674_s2 + $0xad8] sm:$0xff] }
 0x14a   :  { %2750 = vmatpush1.bf16.msra.mxu0 %v3191_v45  ;;  %2873 = vmatpush1.bf16.msra.mxu1 %v3193_v47  ;;  %v3247_v45 = vcombine.low %v395_v32, %v399_v33  ;;  %v3249_v47 = vcombine.low %v396_v34, %v400_v35  ;;  %v424_v62 = vld [vmem:[%s4674_s2 + $0xaf8] sm:$0xff]  ;;  %v451_v32 = vld [vmem:[%s4674_s2 + $0xbd0] sm:$0xff] }
 0x14b   :  { %2751 = vmatprep.subr.bf16.mxu0 %v3200_v48  ;;  %2874 = vmatprep.subr.bf16.mxu1 %v3202_v49  ;;  %v3256_v48 = vcombine.high %v403_v40, %v407_v41  ;;  %v3258_v49 = vcombine.high %v404_v42, %v408_v43  ;;  %v444_v28 = vld [vmem:[%s4674_s2 + $0xb98] sm:$0xff]  ;;  %v455_v33 = vld [vmem:[%s4674_s2 + $0xbf0] sm:$0xff] }
 0x14c   :  { %v448_v29 = vld [vmem:[%s4674_s2 + $0xbb8] sm:$0xff] }
 0x14d   :  { %v452_v34 = vld [vmem:[%s4674_s2 + $0xbd8] sm:$0xff] }
 0x14e   :  { %2752 = vmatpush1.bf16.msra.mxu0 %v3199_v52  ;;  %2875 = vmatpush1.bf16.msra.mxu1 %v3201_v54  ;;  %v3255_v52 = vcombine.low %v403_v40, %v407_v41  ;;  %v3257_v54 = vcombine.low %v404_v42, %v408_v43  ;;  %v456_v35 = vld [vmem:[%s4674_s2 + $0xbf8] sm:$0xff]  ;;  %v3303_v40 = vcombine.low %v451_v32, %v455_v33  ;;  %v457_v42 = vld [vmem:[%s4677_s3] sm:$0xff] }
 0x14f   :  { %2753 = vmatprep.subr.bf16.mxu0 %v3208_v56  ;;  %2876 = vmatprep.subr.bf16.mxu1 %v3210_v57  ;;  %v3264_v56 = vcombine.high %v411_v50, %v415_v51  ;;  %v3266_v57 = vcombine.high %v412_v14, %v416_v21  ;;  %v3305_v41 = vcombine.low %v452_v34, %v456_v35 }
 0x150   :  { %v462_v43 = vrot.slane %v457_v42, %v33_v1 }
 0x152   :  { %2754 = vmatpush1.bf16.msra.mxu0 %v3207_v63  ;;  %2877 = vmatpush1.bf16.msra.mxu1 %v3209_v2  ;;  %v3263_v63 = vcombine.low %v411_v50, %v415_v51  ;;  %v3265_v2 = vcombine.low %v412_v14, %v416_v21 }
 0x153   :  { %2755 = vmatprep.subr.bf16.mxu0 %v3216_v3  ;;  %2878 = vmatprep.subr.bf16.mxu1 %v3218_v5  ;;  %v3272_v3 = vcombine.high %v419_v60, %v423_v61  ;;  %v3274_v5 = vcombine.high %v420_v24, %v424_v62 }
 0x156   :  { %2756 = vmatpush1.bf16.msra.mxu0 %v3215_v11  ;;  %2879 = vmatpush1.bf16.msra.mxu1 %v3217_v12  ;;  %v3271_v11 = vcombine.low %v419_v60, %v423_v61  ;;  %v3273_v12 = vcombine.low %v420_v24, %v424_v62  ;;  %v478_v60 = vrot.slane %v457_v42, %v49_v59 }
 0x157   :  { %2757 = vmatprep.subr.bf16.mxu0 %v3224_v26  ;;  %2880 = vmatprep.subr.bf16.mxu1 %v3226_v13  ;;  %v3280_v26 = vcombine.high %v427_v6, %v431_v7  ;;  %v3282_v13 = vcombine.high %v428_v8, %v432_v9  ;;  %v482_v24 = vrot.slane %v457_v42, %v53_v53 }
 0x15a   :  { %2758 = vmatpush1.bf16.msra.mxu0 %v3223_v20  ;;  %2881 = vmatpush1.bf16.msra.mxu1 %v3225_v22  ;;  %v3279_v20 = vcombine.low %v427_v6, %v431_v7  ;;  %v3281_v22 = vcombine.low %v428_v8, %v432_v9 }
 0x15b   :  { %2759 = vmatprep.subr.bf16.mxu0 %v3232_v19  ;;  %2882 = vmatprep.subr.bf16.mxu1 %v3234_v23  ;;  %v3288_v19 = vcombine.high %v435_v15, %v439_v16  ;;  %v3290_v23 = vcombine.high %v436_v4, %v440_v18 }
 0x15e   :  { %2760 = vmatpush1.bf16.msra.mxu0 %v3231_v30  ;;  %2883 = vmatpush1.bf16.msra.mxu1 %v3233_v17  ;;  %v3287_v30 = vcombine.low %v435_v15, %v439_v16  ;;  %v3289_v17 = vcombine.low %v436_v4, %v440_v18 }
 0x15f   :  { %2761 = vmatprep.subr.bf16.mxu0 %v3240_v36  ;;  %2884 = vmatprep.subr.bf16.mxu1 %v3242_v31  ;;  %v3296_v36 = vcombine.high %v443_v25, %v447_v27  ;;  %v3298_v31 = vcombine.high %v444_v28, %v448_v29 }
 0x162   :  { %2762 = vmatpush1.bf16.msra.mxu0 %v3239_v37  ;;  %2885 = vmatpush1.bf16.msra.mxu1 %v3241_v38  ;;  %v3295_v37 = vcombine.low %v443_v25, %v447_v27  ;;  %v3297_v38 = vcombine.low %v444_v28, %v448_v29 }
 0x163   :  { %2763 = vmatprep.subr.bf16.mxu0 %v3248_v46  ;;  %2886 = vmatprep.subr.bf16.mxu1 %v3250_v39  ;;  %v3304_v46 = vcombine.high %v451_v32, %v455_v33  ;;  %v3306_v39 = vcombine.high %v452_v34, %v456_v35 }
 0x166   :  { %2764 = vmatpush1.bf16.msra.mxu0 %v3247_v45  ;;  %2887 = vmatpush1.bf16.msra.mxu1 %v3249_v47  ;;  %v470_v45 = vrot.slane %v457_v42, %v41_v58  ;;  %v466_v47 = vrot.slane %v457_v42, %v37_v0 }
 0x167   :  { %2765 = vmatprep.subr.bf16.mxu0 %v3256_v48  ;;  %2888 = vmatprep.subr.bf16.mxu1 %v3258_v49  ;;  %v474_v48 = vrot.slane %v457_v42, %v45_v10  ;;  %v485_v10 = vsub.s32 6, %v3471_v55 }
 0x169   :  { %v486_v61 = vrot.slane %v457_v42, %v485_v10 }
 0x16a   :  { %2766 = vmatpush1.bf16.msra.mxu0 %v3255_v52  ;;  %2889 = vmatpush1.bf16.msra.mxu1 %v3257_v54 }
 0x16b   :  { %2767 = vmatprep.subr.bf16.mxu0 %v3264_v56  ;;  %2890 = vmatprep.subr.bf16.mxu1 %v3266_v57  ;;  %v489_v57 = vsub.s32 7, %v3471_v55 }
 0x16d   :  { %v490_v62 = vrot.slane %v457_v42, %v489_v57 }
 0x16e   :  { %2768 = vmatpush1.bf16.msra.mxu0 %v3263_v63  ;;  %2891 = vmatpush1.bf16.msra.mxu1 %v3265_v2 }
 0x16f   :  { %2769 = vmatprep.subr.bf16.mxu0 %v3272_v3  ;;  %2892 = vmatprep.subr.bf16.mxu1 %v3274_v5 }
 0x172   :  { %2770 = vmatpush1.bf16.msra.mxu0 %v3271_v11  ;;  %2893 = vmatpush1.bf16.msra.mxu1 %v3273_v12 }
 0x173   :  { %2771 = vmatprep.subr.bf16.mxu0 %v3280_v26  ;;  %2894 = vmatprep.subr.bf16.mxu1 %v3282_v13 }
 0x176   :  { %2772 = vmatpush1.bf16.msra.mxu0 %v3279_v20  ;;  %2895 = vmatpush1.bf16.msra.mxu1 %v3281_v22 }
 0x177   :  { %2773 = vmatprep.subr.bf16.mxu0 %v3288_v19  ;;  %2896 = vmatprep.subr.bf16.mxu1 %v3290_v23 }
 0x17a   :  { %2774 = vmatpush1.bf16.msra.mxu0 %v3287_v30  ;;  %2897 = vmatpush1.bf16.msra.mxu1 %v3289_v17 }
 0x17b   :  { %2775 = vmatprep.subr.bf16.mxu0 %v3296_v36  ;;  %2898 = vmatprep.subr.bf16.mxu1 %v3298_v31 }
 0x17e   :  { %2776 = vmatpush1.bf16.msra.mxu0 %v3295_v37  ;;  %2899 = vmatpush1.bf16.msra.mxu1 %v3297_v38 }
 0x17f   :  { %2777 = vmatprep.subr.bf16.mxu0 %v3304_v46  ;;  %2900 = vmatprep.subr.bf16.mxu1 %v3306_v39 }
 0x182   :  { %2778 = vmatpush1.bf16.msra.mxu0 %v3303_v40  ;;  %2901 = vmatpush1.bf16.msra.mxu1 %v3305_v41 }
 0x185   :  { %2780 = vmatmul.mubr.bf16.vlgmr.msra.gmra.mrb[4].mxu0 %v4059_v44  ;;  %2903 = vmatmul.mubr.bf16.vlgmr.msra.gmra.mrb[4].mxu1 %v4059_v44 }
 0x198   :  { %v2535_v49 = vpop.f32.mrb[0].mxu0  ;;  %v2658_v51 = vpop.f32.mrb[0].mxu1 }
 0x199   :  { %v3307_v50 = vadd.f32 %v2535_v49, %v462_v43  ;;  %v2537_v44 = vpop.f32.mrb[1].mxu0  ;;  %v3309_v14 = vadd.f32 %v2658_v51, %v470_v45  ;;  %v2660_v52 = vpop.f32.mrb[1].mxu1 }
 0x19a   :  { %v3308_v21 = vadd.f32 %v2537_v44, %v466_v47  ;;  %v2539_v54 = vpop.f32.mrb[2].mxu0  ;;  %v3310_v1 = vadd.f32 %v2660_v52, %v474_v48  ;;  %v2662_v58 = vpop.f32.mrb[2].mxu1 }
 0x19b   :  { %2911 = vst [vmem:[%s4678_s4] sm:$0xff] %v3307_v50  ;;  %v2540_v56 = vpop.f32.mrb[3].mxu0  ;;  %2913 = vst [vmem:[%s4678_s4 + $0x10] sm:$0xff] %v3309_v14  ;;  %v2663_v0 = vpop.f32.mrb[3].mxu1 }
 0x19c   :  { %2912 = vst [vmem:[%s4678_s4 + $0x8] sm:$0xff] %v3308_v21  ;;  %2914 = vst [vmem:[%s4678_s4 + $0x18] sm:$0xff] %v3310_v1 }
 0x258   :  { %v2781_v63 = vpop.f32.mrb[4].mxu0  ;;  %v2904_v3 = vpop.f32.mrb[4].mxu1 }
 0x259   :  { %v3311_v2 = vadd.f32 %v2781_v63, %v478_v60  ;;  %v2783_v5 = vpop.f32.mrb[5].mxu0  ;;  %v3313_v6 = vadd.f32 %v2904_v3, %v486_v61  ;;  %v2906_v8 = vpop.f32.mrb[5].mxu1 }
 0x25a   :  { %v3312_v7 = vadd.f32 %v2783_v5, %v482_v24  ;;  %v2785_v9 = vpop.f32.mrb[6].mxu0  ;;  %v3314_v11 = vadd.f32 %v2906_v8, %v490_v62  ;;  %v2908_v12 = vpop.f32.mrb[6].mxu1 }
 0x25b   :  { %2915 = vst [vmem:[%s4678_s4 + $0x20] sm:$0xff] %v3311_v2  ;;  %v2786_v59 = vpop.f32.mrb[7].mxu0  ;;  %2917 = vst [vmem:[%s4678_s4 + $0x30] sm:$0xff] %v3313_v6  ;;  %v2909_v55 = vpop.f32.mrb[7].mxu1 }
 0x25c   :  { %2916 = vst [vmem:[%s4678_s4 + $0x28] sm:$0xff] %v3312_v7  ;;  %2918 = vst [vmem:[%s4678_s4 + $0x38] sm:$0xff] %v3314_v11 }

</bundles_post_ra>
